<compile_context>
chip_gen: v7x
topology: tpu7x:2x2x1
jax: 0.10.0
libtpu: 0.0.40
codegen_flags: <defaults>
</compile_context>

<pallas_src>
import jax
import jax.numpy as jnp
from jax.experimental import pallas as pl
from jax.experimental.pallas import tpu as pltpu


def attention_kernel(x_ref, w1_ref, b1_ref, w2_ref, b2_ref, w3_ref, b3_ref,
                     out_ref):
    x = x_ref[...]                                  # (Bt, S, D) f32
    x_bf = x.astype(jnp.bfloat16)                   # bf16 MXU operand
    Bt, S, _ = x.shape
    M1 = w1_ref.shape[2]

    # --- h1 = relu(x_flat @ W1 + b1), contracted as sum_s x[:,s,:] @ W1[s] ---
    # S is small & static -> unrolled Python loop; avoids reshaping x across
    # (sublane, lane) tile boundaries.
    h1 = jnp.zeros((Bt, M1), jnp.float32)
    for s in range(S):
        h1 += jnp.dot(x_bf[:, s, :], w1_ref[s],
                      preferred_element_type=jnp.float32)
    h1 = jnp.maximum(h1 + b1_ref[...], 0.0)
    # Dropout(p=0.5): identity in eval/inference mode.

    # --- h2 = relu(h1 @ W2 + b2) ---
    h2 = jnp.dot(h1.astype(jnp.bfloat16), w2_ref[...],
                 preferred_element_type=jnp.float32)
    h2 = jnp.maximum(h2 + b2_ref[...], 0.0)
    # Dropout(p=0.5): identity in eval/inference mode.

    # --- att = relu(h2 @ W3 + b3) ---
    att = jnp.dot(h2.astype(jnp.bfloat16), w3_ref[...],
                  preferred_element_type=jnp.float32)
    att = jnp.maximum(att + b3_ref[...], 0.0)       # (Bt, S)

    # --- softmax over the sequence axis (EUP reciprocal, not VALU divide) ---
    m = jnp.max(att, axis=1, keepdims=True)
    e = jnp.exp(att - m)
    alpha = e * pl.reciprocal(jnp.sum(e, axis=1, keepdims=True), approx=True)

    # --- scale the input by the attention weights ---
    out_ref[...] = (x * alpha[:, :, None]).astype(out_ref.dtype)


def attention_forward(x, params, *, batch_tile=8):
    """x: (B, S, D) float32. params: (w1, b1, w2, b2, w3, b3), weights bf16."""
    B, S, D = x.shape
    w1, b1, w2, b2, w3, b3 = params
    M1 = w1.shape[-1]
    M2 = w2.shape[-1]
    assert w1.shape[0] == S * D and M2 == D and w3.shape[-1] == S

    # Split W1's K axis by sequence position so the kernel never reshapes x.
    w1r = w1.reshape(S, D, M1)

    Bt = min(batch_tile, B)
    assert B % Bt == 0
    grid = (B // Bt,)

    flops = 2 * B * (S * D * M1 + M1 * M2 + M2 * S)
    bytes_accessed = (
        2 * x.size * x.dtype.itemsize                       # x in + out
        + w1.size * w1.dtype.itemsize
        + w2.size * w2.dtype.itemsize
        + w3.size * w3.dtype.itemsize
        + (b1.size + b2.size + b3.size) * 4)

    return pl.pallas_call(
        attention_kernel,
        out_shape=jax.ShapeDtypeStruct((B, S, D), x.dtype),
        grid=grid,
        in_specs=[
            pl.BlockSpec((Bt, S, D), lambda i: (i, 0, 0)),   # x: batch-tiled
            pl.BlockSpec((S, D, M1), lambda i: (0, 0, 0)),   # W1: resident
            pl.BlockSpec((1, M1), lambda i: (0, 0)),
            pl.BlockSpec((M1, M2), lambda i: (0, 0)),        # W2: resident
            pl.BlockSpec((1, M2), lambda i: (0, 0)),
            pl.BlockSpec((M2, S), lambda i: (0, 0)),         # W3: resident
            pl.BlockSpec((1, S), lambda i: (0, 0)),
        ],
        out_specs=pl.BlockSpec((Bt, S, D), lambda i: (i, 0, 0)),
        compiler_params=pltpu.CompilerParams(
            dimension_semantics=("parallel",)),
        cost_estimate=pl.CostEstimate(
            flops=flops, transcendentals=B * S,
            bytes_accessed=bytes_accessed),
    )(x, w1r, b1, w2, b2, w3, b3)


def init_params(key, hidden, m1, m2, seq):
    """Deterministic synthetic weights; weights bf16, biases f32."""
    k1, k2, k3, k4, k5, k6 = jax.random.split(key, 6)
    w1 = (jax.random.normal(k1, (hidden, m1), jnp.float32)
          / jnp.sqrt(hidden)).astype(jnp.bfloat16)
    b1 = jax.random.normal(k2, (1, m1), jnp.float32) * 0.01
    w2 = (jax.random.normal(k3, (m1, m2), jnp.float32)
          / jnp.sqrt(m1)).astype(jnp.bfloat16)
    b2 = jax.random.normal(k4, (1, m2), jnp.float32) * 0.01
    w3 = (jax.random.normal(k5, (m2, seq), jnp.float32)
          / jnp.sqrt(m2)).astype(jnp.bfloat16)
    b3 = jax.random.normal(k6, (1, seq), jnp.float32) * 0.01
    return w1, b1, w2, b2, w3, b3


def reference_forward(x, params):
    """Pure-JAX f32 reference replicating the PyTorch forward (eval mode)."""
    w1, b1, w2, b2, w3, b3 = [p.astype(jnp.float32) for p in params]
    B = x.shape[0]
    xf = x.reshape(B, -1)
    h1 = jnp.maximum(xf @ w1 + b1, 0.0)
    h2 = jnp.maximum(h1 @ w2 + b2, 0.0)
    att = jnp.maximum(h2 @ w3 + b3, 0.0)
    alpha = jax.nn.softmax(att, axis=1)
    return x * alpha[:, :, None]


if __name__ == "__main__":
    # Small shapes consistent with the module: sequence_len=8, mlp2_unit=128,
    # mlp1_unit=384, hidden_size = sequence_len * mlp2_unit = 1024, batch=16.
    B, S, D = 16, 8, 128
    M1, M2 = 384, D
    HIDDEN = S * D

    key = jax.random.PRNGKey(0)
    kx, kp = jax.random.split(key)
    x = jax.random.normal(kx, (B, S, D), jnp.float32)
    params = init_params(kp, HIDDEN, M1, M2, S)

    out = attention_forward(x, params)
    out = jax.block_until_ready(out)

    ref = reference_forward(x, params)
    assert out.shape == (B, S, D)
    max_err = float(jnp.max(jnp.abs(out - ref)))
    # bf16 MXU inputs + approx reciprocal vs. f32 reference -> relaxed tol.
    assert jnp.allclose(out, ref, atol=5e-2, rtol=5e-2), (
        f"mismatch vs reference (max abs err {max_err})")

    print("KERNEL_OK")
</pallas_src>

<mosaic_0001>
module attributes {stable_mosaic.version = 11 : i64} {
  func.func @attention_kernel(%arg0: i32, %arg1: memref<8x8x128xf32, #tpu.memory_space<vmem>>, %arg2: memref<8x128x384xbf16, #tpu.memory_space<vmem>>, %arg3: memref<1x384xf32, #tpu.memory_space<vmem>>, %arg4: memref<384x128xbf16, #tpu.memory_space<vmem>>, %arg5: memref<1x128xf32, #tpu.memory_space<vmem>>, %arg6: memref<128x8xbf16, #tpu.memory_space<vmem>>, %arg7: memref<1x8xf32, #tpu.memory_space<vmem>>, %arg8: memref<8x8x128xf32, #tpu.memory_space<vmem>>) attributes {dimension_semantics = [#tpu.dimension_semantics<parallel>], iteration_bounds = array<i64: 2>, scalar_prefetch = 0 : i64, scratch_operands = 0 : i64, tpu.core_type = #tpu.core_type<tc>, window_params = [{transform_indices = @transform_0, window_bounds = array<i64: 8, 8, 128>}, {pipeline_mode = #tpu.pipeline_mode<synchronous>, transform_indices = @transform_1, window_bounds = array<i64: 8, 128, 384>}, {pipeline_mode = #tpu.pipeline_mode<synchronous>, transform_indices = @transform_2, window_bounds = array<i64: 1, 384>}, {pipeline_mode = #tpu.pipeline_mode<synchronous>, transform_indices = @transform_3, window_bounds = array<i64: 384, 128>}, {pipeline_mode = #tpu.pipeline_mode<synchronous>, transform_indices = @transform_4, window_bounds = array<i64: 1, 128>}, {pipeline_mode = #tpu.pipeline_mode<synchronous>, transform_indices = @transform_5, window_bounds = array<i64: 128, 8>}, {pipeline_mode = #tpu.pipeline_mode<synchronous>, transform_indices = @transform_6, window_bounds = array<i64: 1, 8>}, {transform_indices = @transform_7, window_bounds = array<i64: 8, 8, 128>}]} {
    %c0 = arith.constant 0 : index
    %c0_0 = arith.constant 0 : index
    %c0_1 = arith.constant 0 : index
    %0 = vector.load %arg1[%c0, %c0_0, %c0_1] : memref<8x8x128xf32, #tpu.memory_space<vmem>>, vector<8x8x128xf32>
    %1 = arith.truncf %0 : vector<8x8x128xf32> to vector<8x8x128xbf16>
    %cst = arith.constant 0.000000e+00 : f32
    %2 = vector.broadcast %cst : f32 to vector<8x384xf32>
    %3 = vector.extract_strided_slice %1 {offsets = [0, 0, 0], sizes = [8, 1, 128], strides = [1, 1, 1]} : vector<8x8x128xbf16> to vector<8x1x128xbf16>
    %4 = vector.shape_cast %3 : vector<8x1x128xbf16> to vector<8x128xbf16>
    %c0_2 = arith.constant 0 : index
    %c0_3 = arith.constant 0 : index
    %c0_4 = arith.constant 0 : index
    %5 = vector.load %arg2[%c0_2, %c0_3, %c0_4] : memref<8x128x384xbf16, #tpu.memory_space<vmem>>, vector<1x128x384xbf16>
    %6 = vector.shape_cast %5 : vector<1x128x384xbf16> to vector<128x384xbf16>
    %cst_5 = arith.constant dense<0.000000e+00> : vector<8x384xf32>
    %7 = tpu.matmul %4, %6, %cst_5 {dimension_numbers = #tpu.dot_dimension_numbers<[1], [0], [0], [1], [0, 0, 1, 1], [], []>} : vector<8x128xbf16>, vector<128x384xbf16>, vector<8x384xf32> -> vector<8x384xf32>
    %8 = arith.addf %2, %7 : vector<8x384xf32>
    %9 = vector.extract_strided_slice %1 {offsets = [0, 1, 0], sizes = [8, 1, 128], strides = [1, 1, 1]} : vector<8x8x128xbf16> to vector<8x1x128xbf16>
    %10 = vector.shape_cast %9 : vector<8x1x128xbf16> to vector<8x128xbf16>
    %c1 = arith.constant 1 : index
    %c0_6 = arith.constant 0 : index
    %c0_7 = arith.constant 0 : index
    %11 = vector.load %arg2[%c1, %c0_6, %c0_7] : memref<8x128x384xbf16, #tpu.memory_space<vmem>>, vector<1x128x384xbf16>
    %12 = vector.shape_cast %11 : vector<1x128x384xbf16> to vector<128x384xbf16>
    %cst_8 = arith.constant dense<0.000000e+00> : vector<8x384xf32>
    %13 = tpu.matmul %10, %12, %cst_8 {dimension_numbers = #tpu.dot_dimension_numbers<[1], [0], [0], [1], [0, 0, 1, 1], [], []>} : vector<8x128xbf16>, vector<128x384xbf16>, vector<8x384xf32> -> vector<8x384xf32>
    %14 = arith.addf %8, %13 : vector<8x384xf32>
    %15 = vector.extract_strided_slice %1 {offsets = [0, 2, 0], sizes = [8, 1, 128], strides = [1, 1, 1]} : vector<8x8x128xbf16> to vector<8x1x128xbf16>
    %16 = vector.shape_cast %15 : vector<8x1x128xbf16> to vector<8x128xbf16>
    %c2 = arith.constant 2 : index
    %c0_9 = arith.constant 0 : index
    %c0_10 = arith.constant 0 : index
    %17 = vector.load %arg2[%c2, %c0_9, %c0_10] : memref<8x128x384xbf16, #tpu.memory_space<vmem>>, vector<1x128x384xbf16>
    %18 = vector.shape_cast %17 : vector<1x128x384xbf16> to vector<128x384xbf16>
    %cst_11 = arith.constant dense<0.000000e+00> : vector<8x384xf32>
    %19 = tpu.matmul %16, %18, %cst_11 {dimension_numbers = #tpu.dot_dimension_numbers<[1], [0], [0], [1], [0, 0, 1, 1], [], []>} : vector<8x128xbf16>, vector<128x384xbf16>, vector<8x384xf32> -> vector<8x384xf32>
    %20 = arith.addf %14, %19 : vector<8x384xf32>
    %21 = vector.extract_strided_slice %1 {offsets = [0, 3, 0], sizes = [8, 1, 128], strides = [1, 1, 1]} : vector<8x8x128xbf16> to vector<8x1x128xbf16>
    %22 = vector.shape_cast %21 : vector<8x1x128xbf16> to vector<8x128xbf16>
    %c3 = arith.constant 3 : index
    %c0_12 = arith.constant 0 : index
    %c0_13 = arith.constant 0 : index
    %23 = vector.load %arg2[%c3, %c0_12, %c0_13] : memref<8x128x384xbf16, #tpu.memory_space<vmem>>, vector<1x128x384xbf16>
    %24 = vector.shape_cast %23 : vector<1x128x384xbf16> to vector<128x384xbf16>
    %cst_14 = arith.constant dense<0.000000e+00> : vector<8x384xf32>
    %25 = tpu.matmul %22, %24, %cst_14 {dimension_numbers = #tpu.dot_dimension_numbers<[1], [0], [0], [1], [0, 0, 1, 1], [], []>} : vector<8x128xbf16>, vector<128x384xbf16>, vector<8x384xf32> -> vector<8x384xf32>
    %26 = arith.addf %20, %25 : vector<8x384xf32>
    %27 = vector.extract_strided_slice %1 {offsets = [0, 4, 0], sizes = [8, 1, 128], strides = [1, 1, 1]} : vector<8x8x128xbf16> to vector<8x1x128xbf16>
    %28 = vector.shape_cast %27 : vector<8x1x128xbf16> to vector<8x128xbf16>
    %c4 = arith.constant 4 : index
    %c0_15 = arith.constant 0 : index
    %c0_16 = arith.constant 0 : index
    %29 = vector.load %arg2[%c4, %c0_15, %c0_16] : memref<8x128x384xbf16, #tpu.memory_space<vmem>>, vector<1x128x384xbf16>
    %30 = vector.shape_cast %29 : vector<1x128x384xbf16> to vector<128x384xbf16>
    %cst_17 = arith.constant dense<0.000000e+00> : vector<8x384xf32>
    %31 = tpu.matmul %28, %30, %cst_17 {dimension_numbers = #tpu.dot_dimension_numbers<[1], [0], [0], [1], [0, 0, 1, 1], [], []>} : vector<8x128xbf16>, vector<128x384xbf16>, vector<8x384xf32> -> vector<8x384xf32>
    %32 = arith.addf %26, %31 : vector<8x384xf32>
    %33 = vector.extract_strided_slice %1 {offsets = [0, 5, 0], sizes = [8, 1, 128], strides = [1, 1, 1]} : vector<8x8x128xbf16> to vector<8x1x128xbf16>
    %34 = vector.shape_cast %33 : vector<8x1x128xbf16> to vector<8x128xbf16>
    %c5 = arith.constant 5 : index
    %c0_18 = arith.constant 0 : index
    %c0_19 = arith.constant 0 : index
    %35 = vector.load %arg2[%c5, %c0_18, %c0_19] : memref<8x128x384xbf16, #tpu.memory_space<vmem>>, vector<1x128x384xbf16>
    %36 = vector.shape_cast %35 : vector<1x128x384xbf16> to vector<128x384xbf16>
    %cst_20 = arith.constant dense<0.000000e+00> : vector<8x384xf32>
    %37 = tpu.matmul %34, %36, %cst_20 {dimension_numbers = #tpu.dot_dimension_numbers<[1], [0], [0], [1], [0, 0, 1, 1], [], []>} : vector<8x128xbf16>, vector<128x384xbf16>, vector<8x384xf32> -> vector<8x384xf32>
    %38 = arith.addf %32, %37 : vector<8x384xf32>
    %39 = vector.extract_strided_slice %1 {offsets = [0, 6, 0], sizes = [8, 1, 128], strides = [1, 1, 1]} : vector<8x8x128xbf16> to vector<8x1x128xbf16>
    %40 = vector.shape_cast %39 : vector<8x1x128xbf16> to vector<8x128xbf16>
    %c6 = arith.constant 6 : index
    %c0_21 = arith.constant 0 : index
    %c0_22 = arith.constant 0 : index
    %41 = vector.load %arg2[%c6, %c0_21, %c0_22] : memref<8x128x384xbf16, #tpu.memory_space<vmem>>, vector<1x128x384xbf16>
    %42 = vector.shape_cast %41 : vector<1x128x384xbf16> to vector<128x384xbf16>
    %cst_23 = arith.constant dense<0.000000e+00> : vector<8x384xf32>
    %43 = tpu.matmul %40, %42, %cst_23 {dimension_numbers = #tpu.dot_dimension_numbers<[1], [0], [0], [1], [0, 0, 1, 1], [], []>} : vector<8x128xbf16>, vector<128x384xbf16>, vector<8x384xf32> -> vector<8x384xf32>
    %44 = arith.addf %38, %43 : vector<8x384xf32>
    %45 = vector.extract_strided_slice %1 {offsets = [0, 7, 0], sizes = [8, 1, 128], strides = [1, 1, 1]} : vector<8x8x128xbf16> to vector<8x1x128xbf16>
    %46 = vector.shape_cast %45 : vector<8x1x128xbf16> to vector<8x128xbf16>
    %c7 = arith.constant 7 : index
    %c0_24 = arith.constant 0 : index
    %c0_25 = arith.constant 0 : index
    %47 = vector.load %arg2[%c7, %c0_24, %c0_25] : memref<8x128x384xbf16, #tpu.memory_space<vmem>>, vector<1x128x384xbf16>
    %48 = vector.shape_cast %47 : vector<1x128x384xbf16> to vector<128x384xbf16>
    %cst_26 = arith.constant dense<0.000000e+00> : vector<8x384xf32>
    %49 = tpu.matmul %46, %48, %cst_26 {dimension_numbers = #tpu.dot_dimension_numbers<[1], [0], [0], [1], [0, 0, 1, 1], [], []>} : vector<8x128xbf16>, vector<128x384xbf16>, vector<8x384xf32> -> vector<8x384xf32>
    %50 = arith.addf %44, %49 : vector<8x384xf32>
    %c0_27 = arith.constant 0 : index
    %c0_28 = arith.constant 0 : index
    %51 = vector.load %arg3[%c0_27, %c0_28] : memref<1x384xf32, #tpu.memory_space<vmem>>, vector<1x384xf32>
    %52 = vector.broadcast %51 : vector<1x384xf32> to vector<8x384xf32>
    %53 = arith.addf %50, %52 : vector<8x384xf32>
    %cst_29 = arith.constant 0.000000e+00 : f32
    %54 = vector.broadcast %cst_29 : f32 to vector<8x384xf32>
    %55 = arith.maximumf %53, %54 : vector<8x384xf32>
    %56 = arith.truncf %55 : vector<8x384xf32> to vector<8x384xbf16>
    %c0_30 = arith.constant 0 : index
    %c0_31 = arith.constant 0 : index
    %57 = vector.load %arg4[%c0_30, %c0_31] : memref<384x128xbf16, #tpu.memory_space<vmem>>, vector<384x128xbf16>
    %cst_32 = arith.constant dense<0.000000e+00> : vector<8x128xf32>
    %58 = tpu.matmul %56, %57, %cst_32 {dimension_numbers = #tpu.dot_dimension_numbers<[1], [0], [0], [1], [0, 0, 1, 1], [], []>} : vector<8x384xbf16>, vector<384x128xbf16>, vector<8x128xf32> -> vector<8x128xf32>
    %c0_33 = arith.constant 0 : index
    %c0_34 = arith.constant 0 : index
    %59 = vector.load %arg5[%c0_33, %c0_34] : memref<1x128xf32, #tpu.memory_space<vmem>>, vector<1x128xf32>
    %60 = vector.broadcast %59 : vector<1x128xf32> to vector<8x128xf32>
    %61 = arith.addf %58, %60 : vector<8x128xf32>
    %cst_35 = arith.constant 0.000000e+00 : f32
    %62 = vector.broadcast %cst_35 : f32 to vector<8x128xf32>
    %63 = arith.maximumf %61, %62 : vector<8x128xf32>
    %64 = arith.truncf %63 : vector<8x128xf32> to vector<8x128xbf16>
    %c0_36 = arith.constant 0 : index
    %c0_37 = arith.constant 0 : index
    %65 = vector.load %arg6[%c0_36, %c0_37] : memref<128x8xbf16, #tpu.memory_space<vmem>>, vector<128x8xbf16>
    %cst_38 = arith.constant dense<0.000000e+00> : vector<8x8xf32>
    %66 = tpu.matmul %64, %65, %cst_38 {dimension_numbers = #tpu.dot_dimension_numbers<[1], [0], [0], [1], [0, 0, 1, 1], [], []>} : vector<8x128xbf16>, vector<128x8xbf16>, vector<8x8xf32> -> vector<8x8xf32>
    %c0_39 = arith.constant 0 : index
    %c0_40 = arith.constant 0 : index
    %67 = vector.load %arg7[%c0_39, %c0_40] : memref<1x8xf32, #tpu.memory_space<vmem>>, vector<1x8xf32>
    %68 = vector.broadcast %67 : vector<1x8xf32> to vector<8x8xf32>
    %69 = arith.addf %66, %68 : vector<8x8xf32>
    %cst_41 = arith.constant 0.000000e+00 : f32
    %70 = vector.broadcast %cst_41 : f32 to vector<8x8xf32>
    %71 = arith.maximumf %69, %70 : vector<8x8xf32>
    %cst_42 = arith.constant dense<0xFF800000> : vector<8xf32>
    %72 = vector.multi_reduction <maximumf>, %71, %cst_42 [1] : vector<8x8xf32> to vector<8xf32>
    %73 = vector.shape_cast %72 : vector<8xf32> to vector<8x1xf32>
    %74 = vector.broadcast %73 : vector<8x1xf32> to vector<8x8xf32>
    %75 = arith.subf %71, %74 : vector<8x8xf32>
    %76 = math.exp %75 : vector<8x8xf32>
    %cst_43 = arith.constant dense<0.000000e+00> : vector<8xf32>
    %77 = vector.multi_reduction <add>, %76, %cst_43 [1] : vector<8x8xf32> to vector<8xf32>
    %78 = vector.shape_cast %77 : vector<8xf32> to vector<8x1xf32>
    %79 = tpu.reciprocal %78 {approx = true} : vector<8x1xf32> -> vector<8x1xf32>
    %80 = vector.broadcast %79 : vector<8x1xf32> to vector<8x8xf32>
    %81 = arith.mulf %76, %80 : vector<8x8xf32>
    %82 = vector.shape_cast %81 : vector<8x8xf32> to vector<8x8x1xf32>
    %83 = vector.broadcast %82 : vector<8x8x1xf32> to vector<8x8x128xf32>
    %84 = arith.mulf %0, %83 : vector<8x8x128xf32>
    %c0_44 = arith.constant 0 : index
    %c0_45 = arith.constant 0 : index
    %c0_46 = arith.constant 0 : index
    %85 = vector.load %arg8[%c0_44, %c0_45, %c0_46] : memref<8x8x128xf32, #tpu.memory_space<vmem>>, vector<8x8x128xf32>
    tpu.vector_store %arg8[%c0_44, %c0_45, %c0_46], %84 {strides = array<i32>} : memref<8x8x128xf32, #tpu.memory_space<vmem>>, vector<8x8x128xf32>,
    return
  }
  func.func @transform_0(%arg0: i32) -> (i32, i32, i32) {
    %c0_i32 = arith.constant 0 : i32
    %c0_i32_0 = arith.constant 0 : i32
    %c0_i32_1 = arith.constant 0 : i32
    return %arg0, %c0_i32, %c0_i32_0 : i32, i32, i32
  }
  func.func @transform_1(%arg0: i32) -> (i32, i32, i32) {
    %c0_i32 = arith.constant 0 : i32
    %c0_i32_0 = arith.constant 0 : i32
    %c0_i32_1 = arith.constant 0 : i32
    %c0_i32_2 = arith.constant 0 : i32
    return %c0_i32, %c0_i32_0, %c0_i32_1 : i32, i32, i32
  }
  func.func @transform_2(%arg0: i32) -> (i32, i32) {
    %c0_i32 = arith.constant 0 : i32
    %c0_i32_0 = arith.constant 0 : i32
    %c0_i32_1 = arith.constant 0 : i32
    return %c0_i32, %c0_i32_0 : i32, i32
  }
  func.func @transform_3(%arg0: i32) -> (i32, i32) {
    %c0_i32 = arith.constant 0 : i32
    %c0_i32_0 = arith.constant 0 : i32
    %c0_i32_1 = arith.constant 0 : i32
    return %c0_i32, %c0_i32_0 : i32, i32
  }
  func.func @transform_4(%arg0: i32) -> (i32, i32) {
    %c0_i32 = arith.constant 0 : i32
    %c0_i32_0 = arith.constant 0 : i32
    %c0_i32_1 = arith.constant 0 : i32
    return %c0_i32, %c0_i32_0 : i32, i32
  }
  func.func @transform_5(%arg0: i32) -> (i32, i32) {
    %c0_i32 = arith.constant 0 : i32
    %c0_i32_0 = arith.constant 0 : i32
    %c0_i32_1 = arith.constant 0 : i32
    return %c0_i32, %c0_i32_0 : i32, i32
  }
  func.func @transform_6(%arg0: i32) -> (i32, i32) {
    %c0_i32 = arith.constant 0 : i32
    %c0_i32_0 = arith.constant 0 : i32
    %c0_i32_1 = arith.constant 0 : i32
    return %c0_i32, %c0_i32_0 : i32, i32
  }
  func.func @transform_7(%arg0: i32) -> (i32, i32, i32) {
    %c0_i32 = arith.constant 0 : i32
    %c0_i32_0 = arith.constant 0 : i32
    %c0_i32_1 = arith.constant 0 : i32
    return %arg0, %c0_i32, %c0_i32_0 : i32, i32, i32
  }
}

</mosaic_0001>

<bundles_post_ra>
// kernel: tpu_custom_call.1
= control target key start
LH: loop header
LB: loop body
LE: loop exit
PB: predicated region body
PF: predicated region fallthrough
CT: control target
= control target key end

     0   :  { %12 = vsyncpa [#allocation3], 0  ;;  %s4762_s0 = inlined_call_operand.hbm [shape: f32[16,8,128], index: 0, kind: input, shape index: {}]   ;;  %s4763_s1 = inlined_call_operand.hbm [shape: bf16[8,128,384], index: 1, kind: input, shape index: {}]   ;;  %s4764_s2 = inlined_call_operand.vmem [shape: f32[1,384], index: 2, kind: input, shape index: {}]   ;;  %s4765_s3 = inlined_call_operand.hbm [shape: bf16[384,128], index: 3, kind: input, shape index: {}]   ;;  %s4766_s4 = inlined_call_operand.vmem [shape: f32[1,128], index: 4, kind: input, shape index: {}]   ;;  %s4767_s5 = inlined_call_operand.vmem [shape: bf16[128,8], index: 5, kind: input, shape index: {}]   ;;  %s4768_s6 = inlined_call_operand.vmem [shape: f32[1,8], index: 6, kind: input, shape index: {}]   ;;  %s4769_s7 = inlined_call_operand.hbm [shape: f32[16,8,128], index: 7, kind: output, shape index: {}]  }
   0x1   :  { %14 = vsyncpa [#allocation3 + $0x1], 0 }
   0x2   :  { %15 = vsyncpa [#allocation6], 0 }
   0x3   :  { %16 = vsyncpa [#allocation4], 0 }
   0x4   :  { %18 = vsyncpa [#allocation4 + $0x1], 0  ;;  %s4207_s24 = smov 0   ;;  %s4209_s25 = smov 0  }
   0x5   :  { %s4211_s26 = smov 0   ;;  %s4213_s27 = smov 0  }
   0x6 LB: > { %s4228_s28 = sadd.s32 4294967295, %s4150_s27   ;;  %s3058_s29 = sadd.s32 4294967294, %s4150_s27   ;;  %s4150_s27 = sphi %s4213_s27, %s4789_s27   ;;  %s4146_s26 = sphi %s4211_s26, %s4788_s26   ;;  %s4142_s25 = sphi %s4209_s25, %s4787_s25   ;;  %s4138_s24 = sphi %s4207_s24, %s4786_s24  }
   0x7   : > { %p44_p0 = scmp.ne.s32.totalorder %s4142_s25, %s4138_s24  ;;  %p4770_p1 = scmp.eq.s32.totalorder %s4228_s28, 0 }
   0x8   : > { %p200_p3 = scmp.eq.s32.totalorder %s3058_s29, 1  ;;  %p3059_p5 = scmp.ge.s32.totalorder %s4150_s27, 1 }
   0x9   : > { %p4237_p4 = por %p4770_p1, %p44_p0  ;;  %p207_p7 = scmp.lt.s32.totalorder %s4150_s27, 3 }
   0xa   : > { %p4242_p6 = por %p200_p3, %p44_p0  ;;  %s4152_s10 = smov [#allocation5]  }
   0xb   : > { %s4773_s30 = scalar_select %p4237_p4, 1, 0 }
   0xc   : > { %s4774_s8 = scalar_select %p4242_p6, 1, 0 }
   0xd   : > { %p4247_p8 = pnand %p3059_p5, %p207_p7  ;;  %s219_s11 = sshll.u32 %s4152_s10, 4  ;;  %s4251_s11 = int_to_ptr.vmem [resolvable:$true] %s219_s11 }
   0xe   : > { %s4153_s13 = smov [#allocation7]   ;;  %s3994_s17 = scalar_lea.hbm %s4763_s1, 24576 }
   0xf   : > { %p3628_p9 = pneg %p4247_p8  ;;  %s235_s14 = sshll.u32 %s4153_s13, 4  ;;  %s4262_s14 = int_to_ptr.vmem [resolvable:$true] %s235_s14 }
  0x10   : > { %p3995_p12 = scmp.ne.s32.totalorder %s4763_s1, %s3994_s17  ;;  %p4001_p5 = scmp.lt.u32.totalorder %s3994_s17, %s4763_s1 }
  0x11   : > { %p4258_p11 = pnand %p3628_p9, %p4770_p1 }
  0x13   : > { %p3996_p13 = pneg %p4258_p11 }
  0x15   : > { %p3997_p0 = pnand %p3996_p13, %p3995_p12 }
  0x17   : > { %p3998_p3 = pneg %p3997_p0 }
  0x19   : > { %p4003_p7 = pnand %p4001_p5, %p3998_p3 }
  0x1b   : > { %4006 = shalt.err (!%p4003_p7)
}
  0x1c   : > { %s4007_s22 = scalar_lea.vmem %s4251_s11, 24576  ;;  %p4015_p2 = scmp.lt.s32.totalorder %s4251_s11, %s4251_s11 }
  0x1d   : > { %p4008_p9 = scmp.ne.s32.totalorder %s4251_s11, %s4007_s22  ;;  %p4016_p12 = scmp.lt.s32.totalorder %s4007_s22, %s4007_s22 }
  0x1f   : > { %p4010_p10 = pnand %p4008_p9, %p3996_p13  ;;  %p4017_p0 = por %p4016_p12, %p4015_p2 }
  0x21   : > { %p4011_p1 = pneg %p4010_p10 }
  0x23   : > { %p4018_p6 = pnand %p4017_p0, %p4011_p1 }
  0x25   : > { %4021 = shalt.err (!%p4018_p6)
}
  0x26   : > { %s4154_s23 = smov 192   ;;  %s4155_s29 = smov 12  }
  0x27   : > { %3631 = dma.hbm_to_vmem [thread:$0]  (!%p4258_p11), %s4763_s1, 24576, %s4251_s11, [#allocation6], %s4154_s23, %s4154_s23, %s4155_s29  }
  0x28   : > { %s4022_s17 = scalar_lea.hbm %s4765_s3, 3072 }
  0x29   : > { %p4023_p2 = scmp.ne.s32.totalorder %s4765_s3, %s4022_s17  ;;  %p4029_p10 = scmp.lt.u32.totalorder %s4022_s17, %s4765_s3 }
  0x2b   : > { %p4025_p1 = pnand %p4023_p2, %p3996_p13 }
  0x2d   : > { %p4026_p6 = pneg %p4025_p1 }
  0x2f   : > { %p4031_p3 = pnand %p4029_p10, %p4026_p6 }
  0x31   : > { %4034 = shalt.err (!%p4031_p3)
}
  0x32   : > { %s4035_s11 = scalar_lea.vmem %s4262_s14, 3072  ;;  %p4043_p12 = scmp.lt.s32.totalorder %s4262_s14, %s4262_s14 }
  0x33   : > { %p4036_p5 = scmp.ne.s32.totalorder %s4262_s14, %s4035_s11  ;;  %p4044_p0 = scmp.lt.s32.totalorder %s4035_s11, %s4035_s11 }
  0x35   : > { %p4038_p7 = pnand %p4036_p5, %p3996_p13  ;;  %p4045_p2 = por %p4044_p0, %p4043_p12 }
  0x37   : > { %p4039_p9 = pneg %p4038_p7 }
  0x39   : > { %p4046_p1 = pnand %p4045_p2, %p4039_p9 }
  0x3b   : > { %4049 = shalt.err (!%p4046_p1)
}
  0x3c   : > { %s4156_s22 = smov 64   ;;  %s4157_s23 = smov 4  }
  0x3d   : > { %3634 = dma.hbm_to_vmem [thread:$0]  (!%p4258_p11), %s4765_s3, 3072, %s4262_s14, [#allocation6], %s4156_s22, %s4156_s22, %s4157_s23  }
  0x3e   : > { %s4317_s13 = sadd.s32 1, %s4150_s27   ;;  %s31_s16 = sadd.s32 1, %s4146_s26 }
  0x3f   : > { %s28_s15 = ssub.s32 %s4150_s27, %s4317_s13  ;;  %p38_p6 = scmp.ne.s32.totalorder %s4146_s26, %s4142_s25 }
  0x40   : > { %p29_p13 = scmp.eq.s32.totalorder %s28_s15, 0  ;;  %p39_p10 = scmp.eq.s32.totalorder %s4150_s27, 0 }
  0x41   : > { %p4777_p5 = scmp.eq.s32.totalorder %s4228_s28, 1  ;;  %p3645_p9 = scmp.lt.s32.totalorder %s4150_s27, 2 }
  0x42   : > { %s4326_s17 = scalar_select %p29_p13, %s4146_s26, %s31_s16  }
  0x43   : > { %p40_p3 = por %p39_p10, %p38_p6  ;;  %p4330_p7 = por %p4777_p5, %p38_p6 }
  0x44   : > { %s258_s12 = sand.u32 1, %s4146_s26   ;;  %s3302_s14 = sshll.u32 %s4150_s27, 10 }
  0x45   : > { %s4778_s18 = scalar_select %p4330_p7, 1, 0 }
  0x46   : > { %s3063_s19 = sshll.u32 %s258_s12, 6  ;;  %s4340_s11 = scalar_lea.hbm %s4762_s0, %s3302_s14 }
  0x47   : > { %s262_s22 = scalar_lea.vmem [#allocation2], %s3063_s19  ;;  %p4344_p11 = pnand %p3645_p9, %p40_p3 }
  0x48   : > { %s269_s23 = sshll.u32 %s262_s22, 4  ;;  %s4348_s10 = scalar_lea.sflag [#allocation3], %s258_s12  ;;  %s4342_s23 = int_to_ptr.vmem [resolvable:$true] %s269_s23 }
  0x49   : > { %s4050_s15 = scalar_lea.hbm %s4340_s11, 1024  ;;  %p4052_p0 = pneg %p4344_p11 }
  0x4a   : > { %p4051_p12 = scmp.ne.s32.totalorder %s4340_s11, %s4050_s15  ;;  %s4055_s14 = scalar_lea.hbm %s4762_s0, 2048 }
  0x4b   : > { %p4056_p13 = scmp.lt.u32.totalorder %s4340_s11, %s4762_s0  ;;  %p4057_p6 = scmp.lt.u32.totalorder %s4055_s14, %s4050_s15 }
  0x4c   : > { %p4053_p2 = pnand %p4052_p0, %p4051_p12  ;;  %p4059_p3 = scmp.lt.u32.totalorder %s4050_s15, %s4340_s11 }
  0x4d   : > { %p4058_p10 = por %p4057_p6, %p4056_p13 }
  0x4e   : > { %p4054_p1 = pneg %p4053_p2 }
  0x4f   : > { %p4060_p5 = por %p4059_p3, %p4058_p10 }
  0x51   : > { %p4061_p9 = pnand %p4060_p5, %p4054_p1 }
  0x53   : > { %4064 = shalt.err (!%p4061_p9)
}
  0x54   : > { %s4065_s12 = scalar_lea.vmem %s4342_s23, 1024  ;;  %s4158_s22 = smov [#allocation2]  }
  0x55   : > { %p4066_p12 = scmp.ne.s32.totalorder %s4342_s23, %s4065_s12  ;;  %s4070_s16 = sshll.u32 %s4158_s22, 4  ;;  %s4071_s16 = int_to_ptr.vmem [resolvable:$false] %s4070_s16 }
  0x56   : > { %s4072_s19 = scalar_lea.vmem %s4071_s16, 2048  ;;  %p4073_p4 = scmp.lt.s32.totalorder %s4342_s23, %s4071_s16 }
  0x57   : > { %p4068_p2 = pnand %p4066_p12, %p4052_p0  ;;  %p4074_p13 = scmp.lt.s32.totalorder %s4072_s19, %s4065_s12 }
  0x59   : > { %p4069_p7 = pneg %p4068_p2  ;;  %p4075_p6 = por %p4074_p13, %p4073_p4 }
  0x5b   : > { %p4076_p10 = pnand %p4075_p6, %p4069_p7 }
  0x5d   : > { %4079 = shalt.err (!%p4076_p10)
}
  0x5e   : > { %s4159_s15 = smov 128   ;;  %s4160_s14 = smov 8  }
  0x5f   : > { %3638 = dma.hbm_to_vmem [thread:$0]  (!%p4344_p11), %s4340_s11, 1024, %s4342_s23, %s4348_s10, %s4159_s15, %s4159_s15, %s4160_s14  }
  0x60   : > { %281 = sbr.rel (%p4247_p8) target bundleno = 1498 (0x5da), region = 48  ;;  %s4379_s20 = sand.u32 (!%p4247_p8), 1, %s4142_s25  }
  0x61   : > { %s3067_s21 = sshll.u32 (!%p4247_p8), %s4379_s20, 6  ;;  %s284_s12 = scalar_lea.sflag (!%p4247_p8), [#allocation3], %s4379_s20 }
  0x62   : > { %s4385_s22 = scalar_lea.vmem (!%p4247_p8), [#allocation2], %s3067_s21  ;;  %p4780_p4 = scmp.ne.s32.totalorder (!%p4247_p8), %s4773_s30, 0 }
  0x67   : > { %4125 = dma.done.wait (%p4780_p4), %s284_s12, 1024  }
  0x68   : > { %4127 = vsyncadd (%p4780_p4), %s284_s12, 4294966272  ;;  %p4781_p7 = scmp.eq.s32.totalorder %s4228_s28, 0 }
  0x6a   : > { %4129 = dma.done.wait (%p4781_p7), [#allocation6], 27648   ;;  %p4782_p8 = pmov %p4781_p7 }
  0x6b   : > { %v4161_v0 = vmov 0.0   ;;  %v4162_v1 = vmov 0   ;;  %vm4163_vm0 = vmmov 0   ;;  %v3694_v2 = vld [vmem:[#allocation5 + $0xc4] ss:$12 sps:$4 sm:$0xff]   ;;  %v330_v22 = vld [vmem:[%s4385_s22 + $0x8] sm:$0xff] }
  0x6c   : > { %4131 = vsyncadd (%p4782_p8), [#allocation6], 4294939648  ;;  %3416 = vmatprep.subr.bf16.mxu1 %v4161_v0  ;;  %609 = vmatprep.mubr.bf16.mxu0 %v4162_v1  ;;  %v3696_v3 = vld [vmem:[#allocation5 + $0xc8] ss:$12 sps:$4 sm:$0xff]   ;;  %v3697_v4 = vld [vmem:[#allocation5 + $0xc0] ss:$12 sps:$4 sm:$0xff]   ;;  %v338_v29 = vpack.c.bf16 %v330_v22, %v330_v22 }
  0x6d   : > { %3432 = vmatprep.mubr.msk.bf16.mxu1 %vm4163_vm0, %v4161_v0  ;;  %577 = vmatprep.subr.bf16.mxu0 %v3694_v2  ;;  %v3698_v5 = vld [vmem:[#allocation5 + $0xdc] ss:$12 sps:$4 sm:$0xff]   ;;  %v3700_v6 = vld [vmem:[#allocation5 + $0xe0] ss:$12 sps:$4 sm:$0xff]   ;;  %v3701_v7 = vld [vmem:[#allocation5 + $0xd8] ss:$12 sps:$4 sm:$0xff]  }
  0x6e   : > { %3417 = vmatpush3.bf16.msra.mxu1 %v3696_v3  ;;  %578 = vmatpush1.bf16.msra.mxu0 %v3697_v4  ;;  %v3702_v8 = vld [vmem:[#allocation5 + $0xf4] ss:$12 sps:$4 sm:$0xff]   ;;  %v3704_v9 = vld [vmem:[#allocation5 + $0xf8] ss:$12 sps:$4 sm:$0xff]   ;;  %v3705_v10 = vld [vmem:[#allocation5 + $0xf0] ss:$12 sps:$4 sm:$0xff]   ;;  %v4414_v38 = vunpack.c.l.b16 %v338_v29 }
  0x6f   : > { %3418 = vmatprep.subr.bf16.mxu1 %v4161_v0  ;;  %579 = vmatprep.subr.bf16.mxu0 %v3698_v5  ;;  %v3706_v11 = vld [vmem:[#allocation5 + $0x10c] ss:$12 sps:$4 sm:$0xff]   ;;  %v3708_v12 = vld [vmem:[#allocation5 + $0x110] ss:$12 sps:$4 sm:$0xff]   ;;  %v3709_v13 = vld [vmem:[#allocation5 + $0x108] ss:$12 sps:$4 sm:$0xff]  }
  0x70   : > { %v3710_v14 = vld [vmem:[#allocation5 + $0x124] ss:$12 sps:$4 sm:$0xff]   ;;  %v3712_v15 = vld [vmem:[#allocation5 + $0x128] ss:$12 sps:$4 sm:$0xff]   ;;  %v3713_v16 = vld [vmem:[#allocation5 + $0x120] ss:$12 sps:$4 sm:$0xff]  }
  0x71   : > { %v3714_v17 = vld [vmem:[#allocation5 + $0x13c] ss:$12 sps:$4 sm:$0xff]   ;;  %v3716_v18 = vld [vmem:[#allocation5 + $0x140] ss:$12 sps:$4 sm:$0xff]   ;;  %v3717_v19 = vld [vmem:[#allocation5 + $0x138] ss:$12 sps:$4 sm:$0xff]  }
  0x72   : > { %3419 = vmatpush3.bf16.msra.mxu1 %v3700_v6  ;;  %580 = vmatpush1.bf16.msra.mxu0 %v3701_v7  ;;  %v329_v20 = vld [vmem:[%s4385_s22] sm:$0xff]  ;;  %v331_v23 = vld [vmem:[%s4385_s22 + $0x10] sm:$0xff]  ;;  %v332_v24 = vld [vmem:[%s4385_s22 + $0x18] sm:$0xff]  ;;  %vm427_vm1 = vcmask 1041409   ;;  %vm430_vm2 = vcmask 1042434   ;;  %vm433_vm3 = vcmask 1043459  }
  0x73   : > { %3420 = vmatprep.subr.bf16.mxu1 %v4161_v0  ;;  %581 = vmatprep.subr.bf16.mxu0 %v3702_v8  ;;  %v3718_v21 = vld [vmem:[#allocation5 + $0x154] ss:$12 sps:$4 sm:$0xff]   ;;  %v337_v25 = vpack.c.bf16 %v329_v20, %v329_v20  ;;  %v334_v27 = vld [vmem:[%s4385_s22 + $0x28] sm:$0xff]  ;;  %v339_v30 = vpack.c.bf16 %v331_v23, %v331_v23  ;;  %v340_v31 = vpack.c.bf16 %v332_v24, %v332_v24  ;;  %vm436_vm4 = vcmask 1044484   ;;  %v336_v32 = vld [vmem:[%s4385_s22 + $0x38] sm:$0xff]  ;;  %s325_s30 = scalar_lea.vmem [#allocation8], %s3067_s21 }
  0x74   : > { %v333_v26 = vld [vmem:[%s4385_s22 + $0x20] sm:$0xff]  ;;  %v335_v28 = vld [vmem:[%s4385_s22 + $0x30] sm:$0xff]  ;;  %v342_v34 = vpack.c.bf16 %v334_v27, %v334_v27  ;;  %v344_v37 = vpack.c.bf16 %v336_v32, %v336_v32  ;;  %v3722_v50 = vld [vmem:[#allocation5 + $0x16c] ss:$12 sps:$4 sm:$0xff]   ;;  %vm439_vm5 = vcmask 1045509   ;;  %vm442_vm6 = vcmask 1046534  }
  0x75   : > { %v341_v33 = vpack.c.bf16 %v333_v26, %v333_v26  ;;  %v343_v35 = vpack.c.bf16 %v335_v28, %v335_v28  ;;  %v4412_v36 = vunpack.c.l.b16 %v337_v25  ;;  %v4416_v39 = vunpack.c.l.b16 %v339_v30  ;;  %v3720_v41 = vld [vmem:[#allocation5 + $0x158] ss:$12 sps:$4 sm:$0xff]   ;;  %v3721_v46 = vld [vmem:[#allocation5 + $0x150] ss:$12 sps:$4 sm:$0xff]   ;;  %v3725_v59 = vld [vmem:[#allocation5 + $0x168] ss:$12 sps:$4 sm:$0xff]  }
  0x76   : > { %3421 = vmatpush3.bf16.msra.mxu1 %v3704_v9  ;;  %582 = vmatpush1.bf16.msra.mxu0 %v3705_v10  ;;  %v4418_v40 = vunpack.c.l.b16 %v340_v31  ;;  %v4422_v43 = vunpack.c.l.b16 %v342_v34  ;;  %v4428_v47 = vunpack.c.l.b16 %v344_v37  ;;  %v3724_v56 = vld [vmem:[#allocation5 + $0x170] ss:$12 sps:$4 sm:$0xff]   ;;  %vm445_vm7 = vcmask 1047559   ;;  %v3729_v3 = vld [vmem:[#allocation5 + $0x8] ss:$12 sps:$4 sm:$0xff]   ;;  %s2966_s21 = sshll.u32 %s325_s30, 4  ;;  %s4712_s21 = int_to_ptr.vmem [resolvable:$true] %s2966_s21 }
  0x77   : > { %3422 = vmatprep.subr.bf16.mxu1 %v4161_v0  ;;  %583 = vmatprep.subr.bf16.mxu0 %v3706_v11  ;;  %v4420_v42 = vunpack.c.l.b16 %v341_v33  ;;  %v4424_v44 = vunpack.c.l.b16 %v343_v35  ;;  %v426_v45 = vrot.slane %v4412_v36, 1  ;;  %v429_v48 = vrot.slane %v4416_v39, 7  ;;  %v3728_v62 = vld [vmem:[#allocation5 + $0x4] ss:$12 sps:$4 sm:$0xff]   ;;  %v3726_v5 = vld [vmem:[#allocation5] ss:$12 sps:$4 sm:$0xff]  }
  0x78   : > { %v432_v49 = vrot.slane %v4418_v40, 6  ;;  %v438_v53 = vrot.slane %v4422_v43, 4  ;;  %v444_v58 = vrot.slane %v4428_v47, 2  ;;  %v3732_v6 = vld [vmem:[#allocation5 + $0x1c] ss:$12 sps:$4 sm:$0xff]   ;;  %v658_v10 = vrot.slane %v4414_v38, 7 }
  0x79   : > { %v428_v51 = vsel %vm427_vm1, %v4414_v38, %v426_v45  ;;  %v435_v52 = vrot.slane %v4420_v42, 5  ;;  %v441_v55 = vrot.slane %v4424_v44, 3  ;;  %v3733_v7 = vld [vmem:[#allocation5 + $0x20] ss:$12 sps:$4 sm:$0xff]   ;;  %v3730_v8 = vld [vmem:[#allocation5 + $0x18] ss:$12 sps:$4 sm:$0xff]  }
  0x7a   : > { %3423 = vmatpush3.bf16.msra.mxu1 %v3708_v12  ;;  %584 = vmatpush1.bf16.msra.mxu0 %v3709_v13  ;;  %v431_v54 = vsel %vm430_vm2, %v429_v48, %v428_v51  ;;  %v3736_v9 = vld [vmem:[#allocation5 + $0x34] ss:$12 sps:$4 sm:$0xff]   ;;  %v3737_v11 = vld [vmem:[#allocation5 + $0x38] ss:$12 sps:$4 sm:$0xff]   ;;  %v3734_v12 = vld [vmem:[#allocation5 + $0x30] ss:$12 sps:$4 sm:$0xff]  }
  0x7b   : > { %3424 = vmatprep.subr.bf16.mxu1 %v4161_v0  ;;  %585 = vmatprep.subr.bf16.mxu0 %v3710_v14  ;;  %v434_v57 = vsel %vm433_vm3, %v432_v49, %v431_v54  ;;  %v660_v13 = vrot.slane %v4416_v39, 6  ;;  %v3740_v14 = vld [vmem:[#allocation5 + $0x4c] ss:$12 sps:$4 sm:$0xff]   ;;  %v3744_v20 = vld [vmem:[#allocation5 + $0x64] ss:$12 sps:$4 sm:$0xff]   ;;  %v666_v26 = vrot.slane %v4422_v43, 3 }
  0x7c   : > { %v437_v60 = vsel %vm436_vm4, %v435_v52, %v434_v57  ;;  %v3745_v22 = vld [vmem:[#allocation5 + $0x68] ss:$12 sps:$4 sm:$0xff]   ;;  %v3742_v24 = vld [vmem:[#allocation5 + $0x60] ss:$12 sps:$4 sm:$0xff]   ;;  %v3746_v29 = vld [vmem:[#allocation5 + $0x78] ss:$12 sps:$4 sm:$0xff]  }
  0x7d   : > { %v440_v61 = vsel %vm439_vm5, %v438_v53, %v437_v60  ;;  %v3748_v25 = vld [vmem:[#allocation5 + $0x7c] ss:$12 sps:$4 sm:$0xff]   ;;  %v3749_v28 = vld [vmem:[#allocation5 + $0x80] ss:$12 sps:$4 sm:$0xff]   ;;  %v668_v30 = vrot.slane %v4424_v44, 2  ;;  %v670_v34 = vrot.slane %v4428_v47, 1 }
  0x7e   : > { %3425 = vmatpush3.bf16.msra.mxu1 %v3712_v15  ;;  %586 = vmatpush1.bf16.msra.mxu0 %v3713_v16  ;;  %v443_v63 = vsel %vm442_vm6, %v441_v55, %v440_v61  ;;  %v659_v15 = vsel %vm427_vm1, %v658_v10, %v4412_v36  ;;  %v3741_v16 = vld [vmem:[#allocation5 + $0x50] ss:$12 sps:$4 sm:$0xff]   ;;  %v3752_v31 = vld [vmem:[#allocation5 + $0x94] ss:$12 sps:$4 sm:$0xff]   ;;  %v3753_v33 = vld [vmem:[#allocation5 + $0x98] ss:$12 sps:$4 sm:$0xff]  }
  0x7f   : > { %3426 = vmatprep.subr.bf16.mxu1 %v4161_v0  ;;  %587 = vmatprep.subr.bf16.mxu0 %v3714_v17  ;;  %v446_v2 = vsel %vm445_vm7, %v444_v58, %v443_v63  ;;  %v662_v17 = vrot.slane %v4418_v40, 5  ;;  %v3750_v35 = vld [vmem:[#allocation5 + $0x90] ss:$12 sps:$4 sm:$0xff]   ;;  %v3754_v48 = vld [vmem:[#allocation5 + $0xa8] ss:$12 sps:$4 sm:$0xff]   ;;  %v916_v57 = vrot.slane %v4412_v36, 2 }
  0x80   : > { %v447_v4 = vpack.c.b16 %v446_v2, %v446_v2  ;;  %v3757_v45 = vld [vmem:[#allocation5 + $0xb0] ss:$12 sps:$4 sm:$0xff]   ;;  %v3761_v51 = vld [vmem:[#allocation5 + $0x188] ss:$12 sps:$4 sm:$0xff]   ;;  %v3758_v52 = vld [vmem:[#allocation5 + $0x180] ss:$12 sps:$4 sm:$0xff]  }
  0x81   : > { %v3760_v49 = vld [vmem:[#allocation5 + $0x184] ss:$12 sps:$4 sm:$0xff]   ;;  %v3764_v53 = vld [vmem:[#allocation5 + $0x19c] ss:$12 sps:$4 sm:$0xff]   ;;  %v3765_v54 = vld [vmem:[#allocation5 + $0x1a0] ss:$12 sps:$4 sm:$0xff]  }
  0x82   : > { %3427 = vmatpush3.bf16.msra.mxu1 %v3716_v18  ;;  %588 = vmatpush1.bf16.msra.mxu0 %v3717_v19  ;;  %v3738_v18 = vld [vmem:[#allocation5 + $0x48] ss:$12 sps:$4 sm:$0xff]   ;;  %v661_v19 = vsel %vm430_vm2, %v660_v13, %v659_v15  ;;  %v3762_v55 = vld [vmem:[#allocation5 + $0x198] ss:$12 sps:$4 sm:$0xff]   ;;  %v917_v58 = vrot.slane %v4414_v38, 1  ;;  %v920_v2 = vrot.slane %v4418_v40, 7 }
  0x83   : > { %3428 = vmatprep.subr.bf16.mxu1 %v4161_v0  ;;  %589 = vmatprep.subr.bf16.mxu0 %v3718_v21  ;;  %v664_v21 = vrot.slane %v4420_v42, 4  ;;  %v663_v23 = vsel %vm433_vm3, %v662_v17, %v661_v19  ;;  %v3766_v60 = vld [vmem:[#allocation5 + $0x1b0] ss:$12 sps:$4 sm:$0xff]   ;;  %v3772_v61 = vld [vmem:[#allocation5 + $0x1cc] ss:$12 sps:$4 sm:$0xff]   ;;  %v924_v10 = vrot.slane %v4422_v43, 5 }
  0x84   : > { %v3773_v63 = vld [vmem:[#allocation5 + $0x1d0] ss:$12 sps:$4 sm:$0xff]   ;;  %v3781_v13 = vld [vmem:[#allocation5 + $0x200] ss:$12 sps:$4 sm:$0xff]   ;;  %v926_v15 = vrot.slane %v4424_v44, 4  ;;  %v928_v19 = vrot.slane %v4428_v47, 3 }
  0x85   : > { %v665_v27 = vsel %vm436_vm4, %v664_v21, %v663_v23  ;;  %v3789_v23 = vld [vmem:[#allocation5 + $0x230] ss:$12 sps:$4 sm:$0xff]   ;;  %vm2868_vm8 = vcmask 64512   ;;  %s3303_s9 = sshll.u32 %s4228_s28, 10  ;;  %s2953_s10 = scalar_lea.sflag [#allocation4], %s4379_s20 }
  0x86   : > { %3429 = vmatpush3.bf16.msra.mxu1 %v3720_v41  ;;  %590 = vmatpush1.bf16.msra.mxu0 %v3721_v46  ;;  %v667_v32 = vsel %vm439_vm5, %v666_v26, %v665_v27  ;;  %v3756_v41 = vld [vmem:[#allocation5 + $0xac] ss:$12 sps:$4 sm:$0xff]   ;;  %v3792_v26 = vld [vmem:[#allocation5 + $0x244] ss:$12 sps:$4 sm:$0xff]   ;;  %s4717_s29 = scalar_lea.hbm %s4769_s7, %s3303_s9  ;;  %s4080_s16 = scalar_lea.vmem %s4712_s21, 1024 }
  0x87   : > { %3430 = vmatprep.subr.bf16.mxu1 %v4161_v0  ;;  %591 = vmatprep.subr.bf16.mxu0 %v3722_v50  ;;  %v669_v37 = vsel %vm442_vm6, %v668_v30, %v667_v32  ;;  %v3796_v30 = vld [vmem:[#allocation5 + $0x25c] ss:$12 sps:$4 sm:$0xff]   ;;  %v3794_v32 = vld [vmem:[#allocation5 + $0x258] ss:$12 sps:$4 sm:$0xff]   ;;  %p4081_p11 = scmp.ne.s32.totalorder %s4712_s21, %s4080_s16  ;;  %p4783_p0 = scmp.ne.s32.totalorder %s4778_s18, 0 }
  0x88   : > { %v671_v46 = vsel %vm445_vm7, %v670_v34, %v669_v37  ;;  %v1177_v34 = vrot.slane %v4412_v36, 3  ;;  %v3801_v37 = vld [vmem:[#allocation5 + $0x278] ss:$12 sps:$4 sm:$0xff]   ;;  %s4164_s28 = smov [#allocation8]  }
  0x89   : > { %v672_v50 = vpack.c.b16 %v671_v46, %v671_v46  ;;  %v3804_v46 = vld [vmem:[#allocation5 + $0x28c] ss:$12 sps:$4 sm:$0xff]   ;;  %p4082_p1 = pnand %p4081_p11, %p4783_p0  ;;  %s4084_s19 = sshll.u32 %s4164_s28, 4  ;;  %s4085_s19 = int_to_ptr.vmem [resolvable:$false] %s4084_s19 }
  0x8a   : > { %3431 = vmatpush3.bf16.msra.mxu1 %v3724_v56  ;;  %592 = vmatpush1.bf16.msra.mxu0 %v3725_v59  ;;  %v3768_v56 = vld [vmem:[#allocation5 + $0x1b4] ss:$12 sps:$4 sm:$0xff]   ;;  %v3769_v59 = vld [vmem:[#allocation5 + $0x1b8] ss:$12 sps:$4 sm:$0xff]   ;;  %s4086_s15 = scalar_lea.vmem %s4085_s19, 2048  ;;  %p4087_p5 = scmp.lt.s32.totalorder %s4712_s21, %s4085_s19 }
  0x8b   : > { %3436 = vmatprep.subr.bf16.mxu1 %v4161_v0  ;;  %802 = vmatprep.subr.bf16.mxu0 %v3728_v62  ;;  %v918_v62 = vsel %vm427_vm1, %v917_v58, %v916_v57  ;;  %v3812_v57 = vld [vmem:[#allocation5 + $0x2bc] ss:$12 sps:$4 sm:$0xff]   ;;  %v1185_v58 = vrot.slane %v4422_v43, 6  ;;  %p4083_p3 = pneg %p4082_p1  ;;  %p4088_p9 = scmp.lt.s32.totalorder %s4086_s15, %s4080_s16 }
  0x8d   : > { %3433 = vmatmul.mubr.bf16.vlgmr.msra.gmra.mrb[0].mxu1 %v447_v4  ;;  %610 = vmatmul.mubr.bf16.vlgmr.msra.gmra.mrb[0].mxu0 %v447_v4  ;;  %v919_v4 = vsel %vm430_vm2, %v4416_v39, %v918_v62  ;;  %v3810_v62 = vld [vmem:[#allocation5 + $0x2b8] ss:$12 sps:$4 sm:$0xff]   ;;  %p4089_p12 = por %p4088_p9, %p4087_p5 }
  0x8e   : > { %3437 = vmatpush3.bf16.msra.mxu1 %v3729_v3  ;;  %803 = vmatpush1.bf16.msra.mxu0 %v3726_v5  ;;  %v3770_v3 = vld [vmem:[#allocation5 + $0x1c8] ss:$12 sps:$4 sm:$0xff]   ;;  %v3776_v5 = vld [vmem:[#allocation5 + $0x1e4] ss:$12 sps:$4 sm:$0xff]  }
  0x8f   : > { %3438 = vmatprep.subr.bf16.mxu1 %v4161_v0  ;;  %804 = vmatprep.subr.bf16.mxu0 %v3732_v6  ;;  %v922_v6 = vrot.slane %v4420_v42, 6  ;;  %p4090_p2 = pnand %p4089_p12, %p4083_p3 }
  0x90   : > { %3452 = vmatprep.mubr.msk.bf16.mxu1 %vm4163_vm0, %v4161_v0  ;;  %834 = vmatprep.mubr.bf16.mxu0 %v4162_v1 }
  0x92   : > { %3439 = vmatpush3.bf16.msra.mxu1 %v3733_v7  ;;  %805 = vmatpush1.bf16.msra.mxu0 %v3730_v8  ;;  %v3777_v7 = vld [vmem:[#allocation5 + $0x1e8] ss:$12 sps:$4 sm:$0xff]   ;;  %v921_v8 = vsel %vm433_vm3, %v920_v2, %v919_v4  ;;  %v1189_v4 = vrot.slane %v4428_v47, 4 }
  0x93   : > { %3440 = vmatprep.subr.bf16.mxu1 %v4161_v0  ;;  %806 = vmatprep.subr.bf16.mxu0 %v3736_v9  ;;  %v3774_v9 = vld [vmem:[#allocation5 + $0x1e0] ss:$12 sps:$4 sm:$0xff]  }
  0x96   : > { %3441 = vmatpush3.bf16.msra.mxu1 %v3737_v11  ;;  %807 = vmatpush1.bf16.msra.mxu0 %v3734_v12  ;;  %v3780_v11 = vld [vmem:[#allocation5 + $0x1fc] ss:$12 sps:$4 sm:$0xff]   ;;  %v923_v12 = vsel %vm436_vm4, %v922_v6, %v921_v8 }
  0x97   : > { %3442 = vmatprep.subr.bf16.mxu1 %v4161_v0  ;;  %808 = vmatprep.subr.bf16.mxu0 %v3740_v14  ;;  %v3778_v14 = vld [vmem:[#allocation5 + $0x1f8] ss:$12 sps:$4 sm:$0xff]   ;;  %v925_v17 = vsel %vm439_vm5, %v924_v10, %v923_v12  ;;  %v3821_v8 = vld [vmem:[#allocation5 + $0x2f0] ss:$12 sps:$4 sm:$0xff]   ;;  %v3818_v10 = vld [vmem:[#allocation5 + $0x2e8] ss:$12 sps:$4 sm:$0xff]  }
  0x98   : > { %v927_v21 = vsel %vm442_vm6, %v926_v15, %v925_v17  ;;  %v3828_v15 = vld [vmem:[#allocation5 + $0x31c] ss:$12 sps:$4 sm:$0xff]   ;;  %v3826_v17 = vld [vmem:[#allocation5 + $0x318] ss:$12 sps:$4 sm:$0xff]  }
  0x9a   : > { %3443 = vmatpush3.bf16.msra.mxu1 %v3741_v16  ;;  %809 = vmatpush1.bf16.msra.mxu0 %v3738_v18  ;;  %v3784_v16 = vld [vmem:[#allocation5 + $0x214] ss:$12 sps:$4 sm:$0xff]   ;;  %v3785_v18 = vld [vmem:[#allocation5 + $0x218] ss:$12 sps:$4 sm:$0xff]  }
  0x9b   : > { %3444 = vmatprep.subr.bf16.mxu1 %v4161_v0  ;;  %810 = vmatprep.subr.bf16.mxu0 %v3744_v20  ;;  %v3782_v20 = vld [vmem:[#allocation5 + $0x210] ss:$12 sps:$4 sm:$0xff]  }
  0x9e   : > { %3445 = vmatpush3.bf16.msra.mxu1 %v3745_v22  ;;  %811 = vmatpush1.bf16.msra.mxu0 %v3742_v24  ;;  %v3788_v22 = vld [vmem:[#allocation5 + $0x22c] ss:$12 sps:$4 sm:$0xff]   ;;  %v929_v24 = vsel %vm445_vm7, %v928_v19, %v927_v21  ;;  %v3832_v19 = vld [vmem:[#allocation5 + $0x334] ss:$12 sps:$4 sm:$0xff]  }
  0x9f   : > { %3446 = vmatprep.subr.bf16.mxu1 %v4161_v0  ;;  %812 = vmatprep.subr.bf16.mxu0 %v3748_v25  ;;  %v3786_v25 = vld [vmem:[#allocation5 + $0x228] ss:$12 sps:$4 sm:$0xff]   ;;  %v930_v27 = vpack.c.b16 %v929_v24, %v929_v24  ;;  %v3833_v21 = vld [vmem:[#allocation5 + $0x338] ss:$12 sps:$4 sm:$0xff]  }
  0xa0   : > { %v3836_v24 = vld [vmem:[#allocation5 + $0x34c] ss:$12 sps:$4 sm:$0xff]  }
  0xa2   : > { %3447 = vmatpush3.bf16.msra.mxu1 %v3749_v28  ;;  %813 = vmatpush1.bf16.msra.mxu0 %v3746_v29  ;;  %v3793_v28 = vld [vmem:[#allocation5 + $0x248] ss:$12 sps:$4 sm:$0xff]   ;;  %v3790_v29 = vld [vmem:[#allocation5 + $0x240] ss:$12 sps:$4 sm:$0xff]  }
  0xa3   : > { %3448 = vmatprep.subr.bf16.mxu1 %v4161_v0  ;;  %814 = vmatprep.subr.bf16.mxu0 %v3752_v31  ;;  %v3797_v31 = vld [vmem:[#allocation5 + $0x260] ss:$12 sps:$4 sm:$0xff]  }
  0xa6   : > { %3449 = vmatpush3.bf16.msra.mxu1 %v3753_v33  ;;  %815 = vmatpush1.bf16.msra.mxu0 %v3750_v35  ;;  %v3800_v33 = vld [vmem:[#allocation5 + $0x274] ss:$12 sps:$4 sm:$0xff]   ;;  %v1178_v35 = vrot.slane %v4414_v38, 2 }
  0xa7   : > { %3450 = vmatprep.subr.bf16.mxu1 %v4161_v0  ;;  %816 = vmatprep.subr.bf16.mxu0 %v3756_v41  ;;  %v3798_v41 = vld [vmem:[#allocation5 + $0x270] ss:$12 sps:$4 sm:$0xff]  }
  0xaa   : > { %3451 = vmatpush3.bf16.msra.mxu1 %v3757_v45  ;;  %817 = vmatpush1.bf16.msra.mxu0 %v3754_v48  ;;  %v1180_v45 = vrot.slane %v4416_v39, 1  ;;  %v1179_v48 = vsel %vm427_vm1, %v1178_v35, %v1177_v34  ;;  %v3844_v34 = vld [vmem:[#allocation5 + $0x37c] ss:$12 sps:$4 sm:$0xff]   ;;  %v1446_v35 = vrot.slane %v4422_v43, 7 }
  0xab   : > { %3456 = vmatprep.subr.bf16.mxu1 %v4161_v0  ;;  %1060 = vmatprep.subr.bf16.mxu0 %v3760_v49  ;;  %v3805_v49 = vld [vmem:[#allocation5 + $0x290] ss:$12 sps:$4 sm:$0xff]  }
  0xad   : > { %3453 = vmatmul.mubr.bf16.vlgmr.msra.gmra.mrb[4].mxu1 %v672_v50  ;;  %835 = vmatmul.mubr.bf16.vlgmr.msra.gmra.mrb[4].mxu0 %v672_v50  ;;  %v3802_v50 = vld [vmem:[#allocation5 + $0x288] ss:$12 sps:$4 sm:$0xff]  }
  0xae   : > { %3457 = vmatpush3.bf16.msra.mxu1 %v3761_v51  ;;  %1061 = vmatpush1.bf16.msra.mxu0 %v3758_v52  ;;  %v1181_v51 = vsel %vm430_vm2, %v1180_v45, %v1179_v48  ;;  %v3808_v52 = vld [vmem:[#allocation5 + $0x2a4] ss:$12 sps:$4 sm:$0xff]   ;;  %v1448_v45 = vrot.slane %v4424_v44, 6  ;;  %v1450_v48 = vrot.slane %v4428_v47, 5 }
  0xaf   : > { %3458 = vmatprep.subr.bf16.mxu1 %v4161_v0  ;;  %1062 = vmatprep.subr.bf16.mxu0 %v3764_v53  ;;  %v1183_v53 = vrot.slane %v4420_v42, 7 }
  0xb0   : > { %3472 = vmatprep.mubr.msk.bf16.mxu1 %vm4163_vm0, %v4161_v0  ;;  %1092 = vmatprep.mubr.bf16.mxu0 %v4162_v1 }
  0xb2   : > { %3459 = vmatpush3.bf16.msra.mxu1 %v3765_v54  ;;  %1063 = vmatpush1.bf16.msra.mxu0 %v3762_v55  ;;  %v3809_v54 = vld [vmem:[#allocation5 + $0x2a8] ss:$12 sps:$4 sm:$0xff]   ;;  %v1182_v55 = vsel %vm433_vm3, %v4418_v40, %v1181_v51 }
  0xb3   : > { %3460 = vmatprep.subr.bf16.mxu1 %v4161_v0  ;;  %1064 = vmatprep.subr.bf16.mxu0 %v3768_v56  ;;  %v3806_v56 = vld [vmem:[#allocation5 + $0x2a0] ss:$12 sps:$4 sm:$0xff]  }
  0xb4   : > { %v3848_v51 = vld [vmem:[#allocation5 + $0x394] ss:$12 sps:$4 sm:$0xff]  }
  0xb6   : > { %3461 = vmatpush3.bf16.msra.mxu1 %v3769_v59  ;;  %1065 = vmatpush1.bf16.msra.mxu0 %v3766_v60  ;;  %v1184_v59 = vsel %vm436_vm4, %v1183_v53, %v1182_v55  ;;  %v3813_v60 = vld [vmem:[#allocation5 + $0x2c0] ss:$12 sps:$4 sm:$0xff]   ;;  %v3846_v53 = vld [vmem:[#allocation5 + $0x390] ss:$12 sps:$4 sm:$0xff]   ;;  %v1704_v55 = vrot.slane %v4418_v40, 2 }
  0xb7   : > { %3462 = vmatprep.subr.bf16.mxu1 %v4161_v0  ;;  %1066 = vmatprep.subr.bf16.mxu0 %v3772_v61  ;;  %v1187_v61 = vrot.slane %v4424_v44, 5  ;;  %v1186_v2 = vsel %vm439_vm5, %v1185_v58, %v1184_v59  ;;  %v3853_v59 = vld [vmem:[#allocation5 + $0x3b0] ss:$12 sps:$4 sm:$0xff]  }
  0xb9   : > { %v1188_v6 = vsel %vm442_vm6, %v1187_v61, %v1186_v2 }
  0xba   : > { %3463 = vmatpush3.bf16.msra.mxu1 %v3773_v63  ;;  %1067 = vmatpush1.bf16.msra.mxu0 %v3770_v3  ;;  %v3816_v63 = vld [vmem:[#allocation5 + $0x2d4] ss:$12 sps:$4 sm:$0xff]   ;;  %v3817_v3 = vld [vmem:[#allocation5 + $0x2d8] ss:$12 sps:$4 sm:$0xff]  }
  0xbb   : > { %3464 = vmatprep.subr.bf16.mxu1 %v4161_v0  ;;  %1068 = vmatprep.subr.bf16.mxu0 %v3776_v5  ;;  %v3814_v5 = vld [vmem:[#allocation5 + $0x2d0] ss:$12 sps:$4 sm:$0xff]  }
  0xbe   : > { %3465 = vmatpush3.bf16.msra.mxu1 %v3777_v7  ;;  %1069 = vmatpush1.bf16.msra.mxu0 %v3774_v9  ;;  %v3820_v7 = vld [vmem:[#allocation5 + $0x2ec] ss:$12 sps:$4 sm:$0xff]   ;;  %v1190_v9 = vsel %vm445_vm7, %v1189_v4, %v1188_v6  ;;  %v3860_v4 = vld [vmem:[#allocation5 + $0x3dc] ss:$12 sps:$4 sm:$0xff]  }
  0xbf   : > { %3466 = vmatprep.subr.bf16.mxu1 %v4161_v0  ;;  %1070 = vmatprep.subr.bf16.mxu0 %v3780_v11  ;;  %v3824_v11 = vld [vmem:[#allocation5 + $0x304] ss:$12 sps:$4 sm:$0xff]   ;;  %v1191_v12 = vpack.c.b16 %v1190_v9, %v1190_v9 }
  0xc0   : > { %v3858_v6 = vld [vmem:[#allocation5 + $0x3d8] ss:$12 sps:$4 sm:$0xff]   ;;  %v3862_v9 = vld [vmem:[#allocation5 + $0x3f0] ss:$12 sps:$4 sm:$0xff]  }
  0xc2   : > { %3467 = vmatpush3.bf16.msra.mxu1 %v3781_v13  ;;  %1071 = vmatpush1.bf16.msra.mxu0 %v3778_v14  ;;  %v3825_v13 = vld [vmem:[#allocation5 + $0x308] ss:$12 sps:$4 sm:$0xff]   ;;  %v3822_v14 = vld [vmem:[#allocation5 + $0x300] ss:$12 sps:$4 sm:$0xff]  }
  0xc3   : > { %3468 = vmatprep.subr.bf16.mxu1 %v4161_v0  ;;  %1072 = vmatprep.subr.bf16.mxu0 %v3784_v16  ;;  %v3829_v16 = vld [vmem:[#allocation5 + $0x320] ss:$12 sps:$4 sm:$0xff]  }
  0xc6   : > { %3469 = vmatpush3.bf16.msra.mxu1 %v3785_v18  ;;  %1073 = vmatpush1.bf16.msra.mxu0 %v3782_v20  ;;  %v1438_v18 = vrot.slane %v4412_v36, 4  ;;  %v1439_v20 = vrot.slane %v4414_v38, 3 }
  0xc7   : > { %3470 = vmatprep.subr.bf16.mxu1 %v4161_v0  ;;  %1074 = vmatprep.subr.bf16.mxu0 %v3788_v22  ;;  %v3830_v22 = vld [vmem:[#allocation5 + $0x330] ss:$12 sps:$4 sm:$0xff]  }
  0xca   : > { %3471 = vmatpush3.bf16.msra.mxu1 %v3789_v23  ;;  %1075 = vmatpush1.bf16.msra.mxu0 %v3786_v25  ;;  %v1441_v23 = vrot.slane %v4416_v39, 2  ;;  %v1440_v25 = vsel %vm427_vm1, %v1439_v20, %v1438_v18  ;;  %v3876_v20 = vld [vmem:[#allocation5 + $0x43c] ss:$12 sps:$4 sm:$0xff]  }
  0xcb   : > { %3476 = vmatprep.subr.bf16.mxu1 %v4161_v0  ;;  %1321 = vmatprep.subr.bf16.mxu0 %v3792_v26  ;;  %v3837_v26 = vld [vmem:[#allocation5 + $0x350] ss:$12 sps:$4 sm:$0xff]  }
  0xcd   : > { %3473 = vmatmul.mubr.bf16.vlgmr.msra.gmra.mrb[8].mxu1 %v930_v27  ;;  %1093 = vmatmul.mubr.bf16.vlgmr.msra.gmra.mrb[8].mxu0 %v930_v27  ;;  %v1443_v27 = vrot.slane %v4418_v40, 1 }
  0xce   : > { %3477 = vmatpush3.bf16.msra.mxu1 %v3793_v28  ;;  %1322 = vmatpush1.bf16.msra.mxu0 %v3790_v29  ;;  %v3834_v28 = vld [vmem:[#allocation5 + $0x348] ss:$12 sps:$4 sm:$0xff]   ;;  %v1442_v29 = vsel %vm430_vm2, %v1441_v23, %v1440_v25  ;;  %v3874_v23 = vld [vmem:[#allocation5 + $0x438] ss:$12 sps:$4 sm:$0xff]  }
  0xcf   : > { %3478 = vmatprep.subr.bf16.mxu1 %v4161_v0  ;;  %1323 = vmatprep.subr.bf16.mxu0 %v3796_v30  ;;  %v3840_v30 = vld [vmem:[#allocation5 + $0x364] ss:$12 sps:$4 sm:$0xff]   ;;  %v3880_v25 = vld [vmem:[#allocation5 + $0x454] ss:$12 sps:$4 sm:$0xff]  }
  0xd0   : > { %3492 = vmatprep.mubr.msk.bf16.mxu1 %vm4163_vm0, %v4161_v0  ;;  %1353 = vmatprep.mubr.bf16.mxu0 %v4162_v1 }
  0xd2   : > { %3479 = vmatpush3.bf16.msra.mxu1 %v3797_v31  ;;  %1324 = vmatpush1.bf16.msra.mxu0 %v3794_v32  ;;  %v3841_v31 = vld [vmem:[#allocation5 + $0x368] ss:$12 sps:$4 sm:$0xff]   ;;  %v1444_v32 = vsel %vm433_vm3, %v1443_v27, %v1442_v29  ;;  %v3881_v27 = vld [vmem:[#allocation5 + $0x458] ss:$12 sps:$4 sm:$0xff]   ;;  %v3878_v29 = vld [vmem:[#allocation5 + $0x450] ss:$12 sps:$4 sm:$0xff]  }
  0xd3   : > { %3480 = vmatprep.subr.bf16.mxu1 %v4161_v0  ;;  %1325 = vmatprep.subr.bf16.mxu0 %v3800_v33  ;;  %v3838_v33 = vld [vmem:[#allocation5 + $0x360] ss:$12 sps:$4 sm:$0xff]  }
  0xd6   : > { %3481 = vmatpush3.bf16.msra.mxu1 %v3801_v37  ;;  %1326 = vmatpush1.bf16.msra.mxu0 %v3798_v41  ;;  %v1445_v37 = vsel %vm436_vm4, %v4420_v42, %v1444_v32  ;;  %v3845_v41 = vld [vmem:[#allocation5 + $0x380] ss:$12 sps:$4 sm:$0xff]   ;;  %v3885_v32 = vld [vmem:[#allocation5 + $0x470] ss:$12 sps:$4 sm:$0xff]  }
  0xd7   : > { %3482 = vmatprep.subr.bf16.mxu1 %v4161_v0  ;;  %1327 = vmatprep.subr.bf16.mxu0 %v3804_v46  ;;  %v3842_v46 = vld [vmem:[#allocation5 + $0x378] ss:$12 sps:$4 sm:$0xff]  }
  0xda   : > { %3483 = vmatpush3.bf16.msra.mxu1 %v3805_v49  ;;  %1328 = vmatpush1.bf16.msra.mxu0 %v3802_v50  ;;  %v1699_v49 = vrot.slane %v4412_v36, 5  ;;  %v1700_v50 = vrot.slane %v4414_v38, 4 }
  0xdb   : > { %3484 = vmatprep.subr.bf16.mxu1 %v4161_v0  ;;  %1329 = vmatprep.subr.bf16.mxu0 %v3808_v52  ;;  %v1447_v52 = vsel %vm439_vm5, %v1446_v35, %v1445_v37  ;;  %v3888_v35 = vld [vmem:[#allocation5 + $0x484] ss:$12 sps:$4 sm:$0xff]  }
  0xdc   : > { %v1449_v58 = vsel %vm442_vm6, %v1448_v45, %v1447_v52  ;;  %v3886_v45 = vld [vmem:[#allocation5 + $0x480] ss:$12 sps:$4 sm:$0xff]   ;;  %v1961_v52 = vrot.slane %v4414_v38, 5 }
  0xdd   : > { %v1451_v61 = vsel %vm445_vm7, %v1450_v48, %v1449_v58  ;;  %v3893_v48 = vld [vmem:[#allocation5 + $0x4a0] ss:$12 sps:$4 sm:$0xff]   ;;  %v3901_v58 = vld [vmem:[#allocation5 + $0x4d0] ss:$12 sps:$4 sm:$0xff]  }
  0xde   : > { %3485 = vmatpush3.bf16.msra.mxu1 %v3809_v54  ;;  %1330 = vmatpush1.bf16.msra.mxu0 %v3806_v56  ;;  %v1702_v54 = vrot.slane %v4416_v39, 3  ;;  %v3849_v56 = vld [vmem:[#allocation5 + $0x398] ss:$12 sps:$4 sm:$0xff]   ;;  %v1452_v2 = vpack.c.b16 %v1451_v61, %v1451_v61 }
  0xdf   : > { %3486 = vmatprep.subr.bf16.mxu1 %v4161_v0  ;;  %1331 = vmatprep.subr.bf16.mxu0 %v3812_v57  ;;  %v3852_v57 = vld [vmem:[#allocation5 + $0x3ac] ss:$12 sps:$4 sm:$0xff]  }
  0xe2   : > { %3487 = vmatpush3.bf16.msra.mxu1 %v3813_v60  ;;  %1332 = vmatpush1.bf16.msra.mxu0 %v3810_v62  ;;  %v3850_v60 = vld [vmem:[#allocation5 + $0x3a8] ss:$12 sps:$4 sm:$0xff]   ;;  %v3856_v62 = vld [vmem:[#allocation5 + $0x3c4] ss:$12 sps:$4 sm:$0xff]  }
  0xe3   : > { %3488 = vmatprep.subr.bf16.mxu1 %v4161_v0  ;;  %1333 = vmatprep.subr.bf16.mxu0 %v3816_v63  ;;  %v3857_v63 = vld [vmem:[#allocation5 + $0x3c8] ss:$12 sps:$4 sm:$0xff]  }
  0xe6   : > { %3489 = vmatpush3.bf16.msra.mxu1 %v3817_v3  ;;  %1334 = vmatpush1.bf16.msra.mxu0 %v3814_v5  ;;  %v3854_v3 = vld [vmem:[#allocation5 + $0x3c0] ss:$12 sps:$4 sm:$0xff]  }
  0xe7   : > { %3490 = vmatprep.subr.bf16.mxu1 %v4161_v0  ;;  %1335 = vmatprep.subr.bf16.mxu0 %v3820_v7  ;;  %v3861_v5 = vld [vmem:[#allocation5 + $0x3e0] ss:$12 sps:$4 sm:$0xff]  }
  0xe8   : > { %v3864_v7 = vld [vmem:[#allocation5 + $0x3f4] ss:$12 sps:$4 sm:$0xff]  }
  0xea   : > { %3491 = vmatpush3.bf16.msra.mxu1 %v3821_v8  ;;  %1336 = vmatpush1.bf16.msra.mxu0 %v3818_v10  ;;  %v3865_v8 = vld [vmem:[#allocation5 + $0x3f8] ss:$12 sps:$4 sm:$0xff]  }
  0xeb   : > { %3496 = vmatprep.subr.bf16.mxu1 %v4161_v0  ;;  %1582 = vmatprep.subr.bf16.mxu0 %v3824_v11  ;;  %v3868_v10 = vld [vmem:[#allocation5 + $0x40c] ss:$12 sps:$4 sm:$0xff]   ;;  %v3869_v11 = vld [vmem:[#allocation5 + $0x410] ss:$12 sps:$4 sm:$0xff]  }
  0xed   : > { %3493 = vmatmul.mubr.bf16.vlgmr.msra.gmra.mrb[12].mxu1 %v1191_v12  ;;  %1354 = vmatmul.mubr.bf16.vlgmr.msra.gmra.mrb[12].mxu0 %v1191_v12  ;;  %v1701_v12 = vsel %vm427_vm1, %v1700_v50, %v1699_v49  ;;  %v3890_v49 = vld [vmem:[#allocation5 + $0x498] ss:$12 sps:$4 sm:$0xff]   ;;  %v3896_v50 = vld [vmem:[#allocation5 + $0x4b4] ss:$12 sps:$4 sm:$0xff]  }
  0xee   : > { %3497 = vmatpush3.bf16.msra.mxu1 %v3825_v13  ;;  %1583 = vmatpush1.bf16.msra.mxu0 %v3822_v14  ;;  %v3866_v13 = vld [vmem:[#allocation5 + $0x408] ss:$12 sps:$4 sm:$0xff]   ;;  %v1703_v14 = vsel %vm430_vm2, %v1702_v54, %v1701_v12  ;;  %v3894_v54 = vld [vmem:[#allocation5 + $0x4b0] ss:$12 sps:$4 sm:$0xff]   ;;  %v3913_v12 = vld [vmem:[#allocation5 + $0x518] ss:$12 sps:$4 sm:$0xff]  }
  0xef   : > { %3498 = vmatprep.subr.bf16.mxu1 %v4161_v0  ;;  %1584 = vmatprep.subr.bf16.mxu0 %v3828_v15  ;;  %v3872_v15 = vld [vmem:[#allocation5 + $0x424] ss:$12 sps:$4 sm:$0xff]   ;;  %v1705_v18 = vsel %vm433_vm3, %v1704_v55, %v1703_v14  ;;  %v1963_v55 = vrot.slane %v4416_v39, 4 }
  0xf0   : > { %3512 = vmatprep.mubr.msk.bf16.mxu1 %vm4163_vm0, %v4161_v0  ;;  %1614 = vmatprep.mubr.bf16.mxu0 %v4162_v1  ;;  %v3910_v14 = vld [vmem:[#allocation5 + $0x510] ss:$12 sps:$4 sm:$0xff]  }
  0xf2   : > { %3499 = vmatpush3.bf16.msra.mxu1 %v3829_v16  ;;  %1585 = vmatpush1.bf16.msra.mxu0 %v3826_v17  ;;  %v1706_v16 = vrot.slane %v4420_v42, 1  ;;  %v3873_v17 = vld [vmem:[#allocation5 + $0x428] ss:$12 sps:$4 sm:$0xff]  }
  0xf3   : > { %3500 = vmatprep.subr.bf16.mxu1 %v4161_v0  ;;  %1586 = vmatprep.subr.bf16.mxu0 %v3832_v19  ;;  %v3870_v19 = vld [vmem:[#allocation5 + $0x420] ss:$12 sps:$4 sm:$0xff]  }
  0xf6   : > { %3501 = vmatpush3.bf16.msra.mxu1 %v3833_v21  ;;  %1587 = vmatpush1.bf16.msra.mxu0 %v3830_v22  ;;  %v1707_v21 = vsel %vm436_vm4, %v1706_v16, %v1705_v18  ;;  %v3877_v22 = vld [vmem:[#allocation5 + $0x440] ss:$12 sps:$4 sm:$0xff]  }
  0xf7   : > { %3502 = vmatprep.subr.bf16.mxu1 %v4161_v0  ;;  %1588 = vmatprep.subr.bf16.mxu0 %v3836_v24  ;;  %v1709_v24 = vrot.slane %v4424_v44, 7  ;;  %v3916_v16 = vld [vmem:[#allocation5 + $0x52c] ss:$12 sps:$4 sm:$0xff]  }
  0xfa   : > { %3503 = vmatpush3.bf16.msra.mxu1 %v3837_v26  ;;  %1589 = vmatpush1.bf16.msra.mxu0 %v3834_v28  ;;  %v1708_v26 = vsel %vm439_vm5, %v4422_v43, %v1707_v21  ;;  %v1711_v28 = vrot.slane %v4428_v47, 6 }
  0xfb   : > { %3504 = vmatprep.subr.bf16.mxu1 %v4161_v0  ;;  %1590 = vmatprep.subr.bf16.mxu0 %v3840_v30  ;;  %v1710_v30 = vsel %vm442_vm6, %v1709_v24, %v1708_v26  ;;  %v3924_v24 = vld [vmem:[#allocation5 + $0x55c] ss:$12 sps:$4 sm:$0xff]   ;;  %v3922_v26 = vld [vmem:[#allocation5 + $0x558] ss:$12 sps:$4 sm:$0xff]  }
  0xfe   : > { %3505 = vmatpush3.bf16.msra.mxu1 %v3841_v31  ;;  %1591 = vmatpush1.bf16.msra.mxu0 %v3838_v33  ;;  %v3884_v31 = vld [vmem:[#allocation5 + $0x46c] ss:$12 sps:$4 sm:$0xff]   ;;  %v1712_v33 = vsel %vm445_vm7, %v1711_v28, %v1710_v30  ;;  %v2221_v28 = vrot.slane %v4412_v36, 7 }
  0xff   : > { %3506 = vmatprep.subr.bf16.mxu1 %v4161_v0  ;;  %1592 = vmatprep.subr.bf16.mxu0 %v3844_v34  ;;  %v3882_v34 = vld [vmem:[#allocation5 + $0x468] ss:$12 sps:$4 sm:$0xff]   ;;  %v1713_v37 = vpack.c.b16 %v1712_v33, %v1712_v33  ;;  %v3929_v30 = vld [vmem:[#allocation5 + $0x578] ss:$12 sps:$4 sm:$0xff]  }
 0x100   : > { %v3932_v33 = vld [vmem:[#allocation5 + $0x58c] ss:$12 sps:$4 sm:$0xff]  }
 0x102   : > { %3507 = vmatpush3.bf16.msra.mxu1 %v3845_v41  ;;  %1593 = vmatpush1.bf16.msra.mxu0 %v3842_v46  ;;  %v3889_v41 = vld [vmem:[#allocation5 + $0x488] ss:$12 sps:$4 sm:$0xff]  }
 0x103   : > { %3508 = vmatprep.subr.bf16.mxu1 %v4161_v0  ;;  %1594 = vmatprep.subr.bf16.mxu0 %v3848_v51  ;;  %v3892_v46 = vld [vmem:[#allocation5 + $0x49c] ss:$12 sps:$4 sm:$0xff]   ;;  %v1960_v51 = vrot.slane %v4412_v36, 6  ;;  %v2226_v36 = vrot.slane %v4418_v40, 4 }
 0x106   : > { %3509 = vmatpush3.bf16.msra.mxu1 %v3849_v56  ;;  %1595 = vmatpush1.bf16.msra.mxu0 %v3846_v53  ;;  %v3897_v53 = vld [vmem:[#allocation5 + $0x4b8] ss:$12 sps:$4 sm:$0xff]  }
 0x107   : > { %3510 = vmatprep.subr.bf16.mxu1 %v4161_v0  ;;  %1596 = vmatprep.subr.bf16.mxu0 %v3852_v57  ;;  %v3900_v56 = vld [vmem:[#allocation5 + $0x4cc] ss:$12 sps:$4 sm:$0xff]   ;;  %v1962_v57 = vsel %vm427_vm1, %v1961_v52, %v1960_v51  ;;  %v2232_v51 = vrot.slane %v4424_v44, 1 }
 0x108   : > { %v1964_v61 = vsel %vm430_vm2, %v1963_v55, %v1962_v57 }
 0x10a   : > { %3511 = vmatpush3.bf16.msra.mxu1 %v3853_v59  ;;  %1597 = vmatpush1.bf16.msra.mxu0 %v3850_v60  ;;  %v1965_v59 = vrot.slane %v4418_v40, 3  ;;  %v3898_v60 = vld [vmem:[#allocation5 + $0x4c8] ss:$12 sps:$4 sm:$0xff]  }
 0x10b   : > { %3516 = vmatprep.subr.bf16.mxu1 %v4161_v0  ;;  %1843 = vmatprep.subr.bf16.mxu0 %v3856_v62  ;;  %v3904_v62 = vld [vmem:[#allocation5 + $0x4e4] ss:$12 sps:$4 sm:$0xff]   ;;  %v3940_v40 = vld [vmem:[#allocation5 + $0x5bc] ss:$12 sps:$4 sm:$0xff]  }
 0x10d   : > { %3513 = vmatmul.mubr.bf16.vlgmr.msra.gmra.mrb[16].mxu1 %v1452_v2  ;;  %1615 = vmatmul.mubr.bf16.vlgmr.msra.gmra.mrb[16].mxu0 %v1452_v2  ;;  %v3905_v2 = vld [vmem:[#allocation5 + $0x4e8] ss:$12 sps:$4 sm:$0xff]  }
 0x10e   : > { %3517 = vmatpush3.bf16.msra.mxu1 %v3857_v63  ;;  %1844 = vmatpush1.bf16.msra.mxu0 %v3854_v3  ;;  %v1967_v63 = vrot.slane %v4420_v42, 2  ;;  %v1966_v3 = vsel %vm433_vm3, %v1965_v59, %v1964_v61 }
 0x10f   : > { %3518 = vmatprep.subr.bf16.mxu1 %v4161_v0  ;;  %1845 = vmatprep.subr.bf16.mxu0 %v3860_v4  ;;  %v3902_v4 = vld [vmem:[#allocation5 + $0x4e0] ss:$12 sps:$4 sm:$0xff]  }
 0x110   : > { %3532 = vmatprep.mubr.msk.bf16.mxu1 %vm4163_vm0, %v4161_v0  ;;  %1875 = vmatprep.mubr.bf16.mxu0 %v4162_v1 }
 0x112   : > { %3519 = vmatpush3.bf16.msra.mxu1 %v3861_v5  ;;  %1846 = vmatpush1.bf16.msra.mxu0 %v3858_v6  ;;  %v3908_v5 = vld [vmem:[#allocation5 + $0x4fc] ss:$12 sps:$4 sm:$0xff]   ;;  %v1969_v6 = vrot.slane %v4422_v43, 1 }
 0x113   : > { %3520 = vmatprep.subr.bf16.mxu1 %v4161_v0  ;;  %1847 = vmatprep.subr.bf16.mxu0 %v3864_v7  ;;  %v1968_v7 = vsel %vm436_vm4, %v1967_v63, %v1966_v3  ;;  %v3948_v63 = vld [vmem:[#allocation5 + $0x5ec] ss:$12 sps:$4 sm:$0xff]  }
 0x116   : > { %3521 = vmatpush3.bf16.msra.mxu1 %v3865_v8  ;;  %1848 = vmatpush1.bf16.msra.mxu0 %v3862_v9  ;;  %v3909_v8 = vld [vmem:[#allocation5 + $0x500] ss:$12 sps:$4 sm:$0xff]   ;;  %v3906_v9 = vld [vmem:[#allocation5 + $0x4f8] ss:$12 sps:$4 sm:$0xff]  }
 0x117   : > { %3522 = vmatprep.subr.bf16.mxu1 %v4161_v0  ;;  %1849 = vmatprep.subr.bf16.mxu0 %v3868_v10  ;;  %v3912_v10 = vld [vmem:[#allocation5 + $0x514] ss:$12 sps:$4 sm:$0xff]  }
 0x11a   : > { %3523 = vmatpush3.bf16.msra.mxu1 %v3869_v11  ;;  %1850 = vmatpush1.bf16.msra.mxu0 %v3866_v13  ;;  %v1970_v11 = vsel %vm439_vm5, %v1969_v6, %v1968_v7  ;;  %v1972_v13 = vrot.slane %v4428_v47, 7 }
 0x11b   : > { %3524 = vmatprep.subr.bf16.mxu1 %v4161_v0  ;;  %1851 = vmatprep.subr.bf16.mxu0 %v3872_v15  ;;  %v1971_v15 = vsel %vm442_vm6, %v4424_v44, %v1970_v11 }
 0x11c   : > { %v1973_v18 = vsel %vm445_vm7, %v1972_v13, %v1971_v15 }
 0x11d   : > { %v1974_v21 = vpack.c.b16 %v1973_v18, %v1973_v18 }
 0x11e   : > { %3525 = vmatpush3.bf16.msra.mxu1 %v3873_v17  ;;  %1852 = vmatpush1.bf16.msra.mxu0 %v3870_v19  ;;  %v3917_v17 = vld [vmem:[#allocation5 + $0x530] ss:$12 sps:$4 sm:$0xff]   ;;  %v3914_v19 = vld [vmem:[#allocation5 + $0x528] ss:$12 sps:$4 sm:$0xff]  }
 0x11f   : > { %3526 = vmatprep.subr.bf16.mxu1 %v4161_v0  ;;  %1853 = vmatprep.subr.bf16.mxu0 %v3876_v20  ;;  %v3920_v20 = vld [vmem:[#allocation5 + $0x544] ss:$12 sps:$4 sm:$0xff]  }
 0x122   : > { %3527 = vmatpush3.bf16.msra.mxu1 %v3877_v22  ;;  %1854 = vmatpush1.bf16.msra.mxu0 %v3874_v23  ;;  %v3921_v22 = vld [vmem:[#allocation5 + $0x548] ss:$12 sps:$4 sm:$0xff]   ;;  %v3918_v23 = vld [vmem:[#allocation5 + $0x540] ss:$12 sps:$4 sm:$0xff]  }
 0x123   : > { %3528 = vmatprep.subr.bf16.mxu1 %v4161_v0  ;;  %1855 = vmatprep.subr.bf16.mxu0 %v3880_v25  ;;  %v3925_v25 = vld [vmem:[#allocation5 + $0x560] ss:$12 sps:$4 sm:$0xff]  }
 0x126   : > { %3529 = vmatpush3.bf16.msra.mxu1 %v3881_v27  ;;  %1856 = vmatpush1.bf16.msra.mxu0 %v3878_v29  ;;  %v3928_v27 = vld [vmem:[#allocation5 + $0x574] ss:$12 sps:$4 sm:$0xff]   ;;  %v2222_v29 = vrot.slane %v4414_v38, 6 }
 0x127   : > { %3530 = vmatprep.subr.bf16.mxu1 %v4161_v0  ;;  %1857 = vmatprep.subr.bf16.mxu0 %v3884_v31  ;;  %v3926_v31 = vld [vmem:[#allocation5 + $0x570] ss:$12 sps:$4 sm:$0xff]  }
 0x12a   : > { %3531 = vmatpush3.bf16.msra.mxu1 %v3885_v32  ;;  %1858 = vmatpush1.bf16.msra.mxu0 %v3882_v34  ;;  %v2224_v32 = vrot.slane %v4416_v39, 5  ;;  %v2223_v34 = vsel %vm427_vm1, %v2222_v29, %v2221_v28  ;;  %v3937_v39 = vld [vmem:[#allocation5 + $0x5a8] ss:$12 sps:$4 sm:$0xff]   ;;  %v3951_v28 = vld [vmem:[#allocation7 + $0x40] sm:$0xff]  }
 0x12b   : > { %3536 = vmatprep.subr.bf16.mxu1 %v4161_v0  ;;  %2104 = vmatprep.subr.bf16.mxu0 %v3888_v35  ;;  %v3933_v35 = vld [vmem:[#allocation5 + $0x590] ss:$12 sps:$4 sm:$0xff]   ;;  %v3952_v29 = vld [vmem:[#allocation7] sm:$0xff]  }
 0x12c   : > { %v2225_v38 = vsel %vm430_vm2, %v2224_v32, %v2223_v34  ;;  %v3955_v32 = vld [vmem:[#allocation7 + $0x8] sm:$0xff]   ;;  %v3956_v34 = vld [vmem:[#allocation7 + $0x90] sm:$0xff]  }
 0x12d   : > { %3533 = vmatmul.mubr.bf16.vlgmr.msra.gmra.mrb[20].mxu1 %v1713_v37  ;;  %1876 = vmatmul.mubr.bf16.vlgmr.msra.gmra.mrb[20].mxu0 %v1713_v37  ;;  %v3936_v37 = vld [vmem:[#allocation5 + $0x5a4] ss:$12 sps:$4 sm:$0xff]  }
 0x12e   : > { %3537 = vmatpush3.bf16.msra.mxu1 %v3889_v41  ;;  %2105 = vmatpush1.bf16.msra.mxu0 %v3886_v45  ;;  %v2228_v41 = vrot.slane %v4420_v42, 3  ;;  %v2227_v45 = vsel %vm433_vm3, %v2226_v36, %v2225_v38  ;;  %v3938_v42 = vld [vmem:[#allocation5 + $0x5b8] ss:$12 sps:$4 sm:$0xff]  }
 0x12f   : > { %3538 = vmatprep.subr.bf16.mxu1 %v4161_v0  ;;  %2106 = vmatprep.subr.bf16.mxu0 %v3892_v46  ;;  %v3934_v46 = vld [vmem:[#allocation5 + $0x5a0] ss:$12 sps:$4 sm:$0xff]   ;;  %v3960_v36 = vld [vmem:[#allocation7 + $0x58] sm:$0xff]  }
 0x130   : > { %3552 = vmatprep.mubr.msk.bf16.mxu1 %vm4163_vm0, %v4161_v0  ;;  %2136 = vmatprep.mubr.bf16.mxu0 %v4162_v1  ;;  %v3961_v38 = vld [vmem:[#allocation7 + $0x18] sm:$0xff]  }
 0x132   : > { %3539 = vmatpush3.bf16.msra.mxu1 %v3893_v48  ;;  %2107 = vmatpush1.bf16.msra.mxu0 %v3890_v49  ;;  %v2230_v48 = vrot.slane %v4422_v43, 2  ;;  %v2229_v49 = vsel %vm436_vm4, %v2228_v41, %v2227_v45  ;;  %v3945_v43 = vld [vmem:[#allocation5 + $0x5d8] ss:$12 sps:$4 sm:$0xff]   ;;  %v3965_v45 = vld [vmem:[#allocation7 + $0xa8] sm:$0xff]  }
 0x133   : > { %3540 = vmatprep.subr.bf16.mxu1 %v4161_v0  ;;  %2108 = vmatprep.subr.bf16.mxu0 %v3896_v50  ;;  %v3941_v50 = vld [vmem:[#allocation5 + $0x5c0] ss:$12 sps:$4 sm:$0xff]  }
 0x134   : > { %v3962_v41 = vld [vmem:[#allocation7 + $0xa0] sm:$0xff]  }
 0x136   : > { %3541 = vmatpush3.bf16.msra.mxu1 %v3897_v53  ;;  %2109 = vmatpush1.bf16.msra.mxu0 %v3894_v54  ;;  %v3944_v53 = vld [vmem:[#allocation5 + $0x5d4] ss:$12 sps:$4 sm:$0xff]   ;;  %v2231_v54 = vsel %vm439_vm5, %v2230_v48, %v2229_v49 }
 0x137   : > { %3542 = vmatprep.subr.bf16.mxu1 %v4161_v0  ;;  %2110 = vmatprep.subr.bf16.mxu0 %v3900_v56  ;;  %v3968_v49 = vld [vmem:[#allocation7 + $0xb0] sm:$0xff]  }
 0x13a   : > { %3543 = vmatpush3.bf16.msra.mxu1 %v3901_v58  ;;  %2111 = vmatpush1.bf16.msra.mxu0 %v3898_v60  ;;  %v3942_v60 = vld [vmem:[#allocation5 + $0x5d0] ss:$12 sps:$4 sm:$0xff]  }
 0x13b   : > { %3544 = vmatprep.subr.bf16.mxu1 %v4161_v0  ;;  %2112 = vmatprep.subr.bf16.mxu0 %v3904_v62  ;;  %v2233_v62 = vsel %vm442_vm6, %v2232_v51, %v2231_v54 }
 0x13c   : > { %v2234_v3 = vsel %vm445_vm7, %v4428_v47, %v2233_v62  ;;  %v3973_v62 = vld [vmem:[#allocation7 + $0x38] sm:$0xff]  }
 0x13e   : > { %3545 = vmatpush3.bf16.msra.mxu1 %v3905_v2  ;;  %2113 = vmatpush1.bf16.msra.mxu0 %v3902_v4  ;;  %v3949_v2 = vld [vmem:[#allocation5 + $0x5f0] ss:$12 sps:$4 sm:$0xff]   ;;  %v3946_v4 = vld [vmem:[#allocation5 + $0x5e8] ss:$12 sps:$4 sm:$0xff]  }
 0x13f   : > { %3546 = vmatprep.subr.bf16.mxu1 %v4161_v0  ;;  %2114 = vmatprep.subr.bf16.mxu0 %v3908_v5  ;;  %v2235_v5 = vpack.c.b16 %v2234_v3, %v2234_v3 }
 0x142   : > { %3547 = vmatpush3.bf16.msra.mxu1 %v3909_v8  ;;  %2115 = vmatpush1.bf16.msra.mxu0 %v3906_v9 }
 0x143   : > { %3548 = vmatprep.subr.bf16.mxu1 %v4161_v0  ;;  %2116 = vmatprep.subr.bf16.mxu0 %v3912_v10 }
 0x146   : > { %3549 = vmatpush3.bf16.msra.mxu1 %v3913_v12  ;;  %2117 = vmatpush1.bf16.msra.mxu0 %v3910_v14 }
 0x147   : > { %3550 = vmatprep.subr.bf16.mxu1 %v4161_v0  ;;  %2118 = vmatprep.subr.bf16.mxu0 %v3916_v16 }
 0x14a   : > { %3551 = vmatpush3.bf16.msra.mxu1 %v3917_v17  ;;  %2119 = vmatpush1.bf16.msra.mxu0 %v3914_v19 }
 0x14b   : > { %3556 = vmatprep.subr.bf16.mxu1 %v4161_v0  ;;  %2365 = vmatprep.subr.bf16.mxu0 %v3920_v20 }
 0x14d   : > { %3553 = vmatmul.mubr.bf16.vlgmr.msra.gmra.mrb[24].mxu1 %v1974_v21  ;;  %2137 = vmatmul.mubr.bf16.vlgmr.msra.gmra.mrb[24].mxu0 %v1974_v21 }
 0x14e   : > { %3557 = vmatpush3.bf16.msra.mxu1 %v3921_v22  ;;  %2366 = vmatpush1.bf16.msra.mxu0 %v3918_v23 }
 0x14f   : > { %3558 = vmatprep.subr.bf16.mxu1 %v4161_v0  ;;  %2367 = vmatprep.subr.bf16.mxu0 %v3924_v24 }
 0x150   : > { %3572 = vmatprep.mubr.msk.bf16.mxu1 %vm4163_vm0, %v4161_v0  ;;  %2397 = vmatprep.mubr.bf16.mxu0 %v4162_v1  ;;  %v3930_v1 = vld [vmem:[#allocation5 + $0x588] ss:$12 sps:$4 sm:$0xff]  }
 0x152   : > { %3559 = vmatpush3.bf16.msra.mxu1 %v3925_v25  ;;  %2368 = vmatpush1.bf16.msra.mxu0 %v3922_v26 }
 0x153   : > { %3560 = vmatprep.subr.bf16.mxu1 %v4161_v0  ;;  %2369 = vmatprep.subr.bf16.mxu0 %v3928_v27  ;;  %v3950_v27 = vld [vmem:[#allocation7 + $0x80] sm:$0xff]  }
 0x156   : > { %3561 = vmatpush3.bf16.msra.mxu1 %v3929_v30  ;;  %2370 = vmatpush1.bf16.msra.mxu0 %v3926_v31  ;;  %v3954_v30 = vld [vmem:[#allocation7 + $0x48] sm:$0xff]  }
 0x157   : > { %3562 = vmatprep.subr.bf16.mxu1 %v4161_v0  ;;  %2371 = vmatprep.subr.bf16.mxu0 %v3932_v33  ;;  %v3953_v31 = vld [vmem:[#allocation7 + $0x88] sm:$0xff]   ;;  %v3957_v33 = vld [vmem:[#allocation7 + $0x50] sm:$0xff]  }
 0x15a   : > { %3563 = vmatpush3.bf16.msra.mxu1 %v3933_v35  ;;  %2372 = vmatpush1.bf16.msra.mxu0 %v3930_v1  ;;  %v3958_v35 = vld [vmem:[#allocation7 + $0x10] sm:$0xff]   ;;  %v3959_v1 = vld [vmem:[#allocation7 + $0x98] sm:$0xff]  }
 0x15b   : > { %3564 = vmatprep.subr.bf16.mxu1 %v4161_v0  ;;  %2373 = vmatprep.subr.bf16.mxu0 %v3936_v37  ;;  %v3963_v37 = vld [vmem:[#allocation7 + $0x60] sm:$0xff]  }
 0x15e   : > { %3565 = vmatpush3.bf16.msra.mxu1 %v3937_v39  ;;  %2374 = vmatpush1.bf16.msra.mxu0 %v3934_v46  ;;  %v3964_v39 = vld [vmem:[#allocation7 + $0x20] sm:$0xff]   ;;  %v3966_v46 = vld [vmem:[#allocation7 + $0x68] sm:$0xff]  }
 0x15f   : > { %3566 = vmatprep.subr.bf16.mxu1 %v4161_v0  ;;  %2375 = vmatprep.subr.bf16.mxu0 %v3940_v40  ;;  %v3967_v40 = vld [vmem:[#allocation7 + $0x28] sm:$0xff]  }
 0x160   : > { %v652_v52 = vpop.f32.mrb[0].mxu1  ;;  %v611_v55 = vpop.f32.mrb[0].mxu0 }
 0x161   : > { %v3434_v56 = vpop.f32.mrb[1].mxu1  ;;  %v613_v57 = vpop.f32.mrb[1].mxu0 }
 0x162   : > { %3567 = vmatpush3.bf16.msra.mxu1 %v3941_v50  ;;  %v655_v58 = vpop.f32.mrb[2].mxu1  ;;  %v615_v59 = vpop.f32.mrb[2].mxu0  ;;  %2376 = vmatpush1.bf16.msra.mxu0 %v3938_v42 }
 0x163   : > { %3568 = vmatprep.subr.bf16.mxu1 %v4161_v0  ;;  %v3435_v61 = vpop.f32.mrb[3].mxu1  ;;  %v616_v44 = vpop.f32.mrb[3].mxu0  ;;  %2377 = vmatprep.subr.bf16.mxu0 %v3944_v53  ;;  %v3970_v58 = vld [vmem:[#allocation7 + $0x30] sm:$0xff]  }
 0x164   : > { %v3972_v61 = vld [vmem:[#allocation7 + $0x78] sm:$0xff]  }
 0x166   : > { %3569 = vmatpush3.bf16.msra.mxu1 %v3945_v43  ;;  %2378 = vmatpush1.bf16.msra.mxu0 %v3942_v60  ;;  %v3971_v60 = vld [vmem:[#allocation7 + $0xb8] sm:$0xff]  }
 0x167   : > { %3570 = vmatprep.subr.bf16.mxu1 %v4161_v0  ;;  %2379 = vmatprep.subr.bf16.mxu0 %v3948_v63 }
 0x16a   : > { %3571 = vmatpush3.bf16.msra.mxu1 %v3949_v2  ;;  %2380 = vmatpush1.bf16.msra.mxu0 %v3946_v4 }
 0x16b   : > { %3576 = vmatprep.subr.bf16.mxu1 %v4161_v0  ;;  %3376 = vmatprep.subr.bf16.mxu0 %v3951_v28 }
 0x16d   : > { %3573 = vmatmul.mubr.bf16.vlgmr.msra.gmra.mrb[28].mxu1 %v2235_v5  ;;  %2398 = vmatmul.mubr.bf16.vlgmr.msra.gmra.mrb[28].mxu0 %v2235_v5 }
 0x16e   : > { %3592 = vmatprep.mubr.msk.bf16.mxu1 %vm4163_vm0, %v4161_v0  ;;  %3577 = vmatpush3.bf16.msra.mxu1 %v3950_v27 }
 0x16f   : > { %3377 = vmatpush3.bf16.msra.mxu0 %v3952_v29  ;;  %3578 = vmatprep.subr.bf16.mxu1 %v4161_v0 }
 0x170   : > { %3378 = vmatprep.subr.bf16.mxu0 %v3954_v30 }
 0x172   : > { %3579 = vmatpush3.bf16.msra.mxu1 %v3953_v31 }
 0x173   : > { %3379 = vmatpush3.bf16.msra.mxu0 %v3955_v32  ;;  %3580 = vmatprep.subr.bf16.mxu1 %v4161_v0  ;;  %v2451_v32 = vlaneseq }
 0x174   : > { %3380 = vmatprep.subr.bf16.mxu0 %v3957_v33 }
 0x175   : > { %v4638_v33 = vshrl.u32 %v2451_v32, 7 }
 0x176   : > { %3581 = vmatpush3.bf16.msra.mxu1 %v3956_v34 }
 0x177   : > { %3381 = vmatpush3.bf16.msra.mxu0 %v3958_v35  ;;  %3582 = vmatprep.subr.bf16.mxu1 %v4161_v0  ;;  %v2461_v34 = vsub.s32 2, %v4638_v33  ;;  %v2449_v35 = vld [vmem:[%s4764_s2] sm:$0x7] }
 0x178   : > { %3382 = vmatprep.subr.bf16.mxu0 %v3960_v36  ;;  %v2453_v36 = vsub.s32 0, %v4638_v33 }
 0x17a   : > { %3583 = vmatpush3.bf16.msra.mxu1 %v3959_v1  ;;  %v2457_v1 = vsub.s32 1, %v4638_v33 }
 0x17b   : > { %3383 = vmatpush3.bf16.msra.mxu0 %v3961_v38  ;;  %3584 = vmatprep.subr.bf16.mxu1 %v4161_v0  ;;  %v2462_v38 = vrot.slane %v2449_v35, %v2461_v34 }
 0x17c   : > { %3384 = vmatprep.subr.bf16.mxu0 %v3963_v37 }
 0x17e   : > { %3585 = vmatpush3.bf16.msra.mxu1 %v3962_v41  ;;  %v2454_v41 = vrot.slane %v2449_v35, %v2453_v36 }
 0x17f   : > { %3385 = vmatpush3.bf16.msra.mxu0 %v3964_v39  ;;  %3586 = vmatprep.subr.bf16.mxu1 %v4161_v0 }
 0x180   : > { %v877_v6 = vpop.f32.mrb[4].mxu1  ;;  %v836_v8 = vpop.f32.mrb[4].mxu0  ;;  %3386 = vmatprep.subr.bf16.mxu0 %v3966_v46  ;;  %v2458_v46 = vrot.slane %v2449_v35, %v2457_v1 }
 0x181   : > { %v878_v7 = vadd.f32 %v877_v6, %v652_v52  ;;  %v3454_v9 = vpop.f32.mrb[5].mxu1  ;;  %v837_v47 = vadd.f32 %v836_v8, %v611_v55  ;;  %v838_v10 = vpop.f32.mrb[5].mxu0  ;;  %v3969_v55 = vld [vmem:[#allocation7 + $0x70] sm:$0xff]  }
 0x182   : > { %v880_v11 = vpop.f32.mrb[6].mxu1  ;;  %v839_v12 = vadd.f32 %v838_v10, %v613_v57  ;;  %v840_v13 = vpop.f32.mrb[6].mxu0  ;;  %3587 = vmatpush3.bf16.msra.mxu1 %v3965_v45 }
 0x183   : > { %v3455_v14 = vpop.f32.mrb[7].mxu1  ;;  %v841_v15 = vpop.f32.mrb[7].mxu0  ;;  %3588 = vmatprep.subr.bf16.mxu1 %v4161_v0  ;;  %3387 = vmatpush3.bf16.msra.mxu0 %v3967_v40 }
 0x184   : > { %3388 = vmatprep.subr.bf16.mxu0 %v3969_v55 }
 0x186   : > { %3589 = vmatpush3.bf16.msra.mxu1 %v3968_v49 }
 0x187   : > { %3590 = vmatprep.subr.bf16.mxu1 %v4161_v0  ;;  %3389 = vmatpush3.bf16.msra.mxu0 %v3970_v58 }
 0x188   : > { %3390 = vmatprep.subr.bf16.mxu0 %v3972_v61  ;;  %v3974_v61 = vld [vmem:[%s4767_s5] sm:$0xff]  }
 0x18a   : > { %3591 = vmatpush3.bf16.msra.mxu1 %v3971_v60 }
 0x18b   : > { %3391 = vmatpush3.bf16.msra.mxu0 %v3973_v62 }
 0x18c   : > { %3596 = vmatprep.subr.bf16.mxu0 %v4161_v0 }
 0x1a0   : > { %v1135_v16 = vpop.f32.mrb[8].mxu1  ;;  %v1094_v18 = vpop.f32.mrb[8].mxu0 }
 0x1a1   : > { %v1143_v17 = vadd.f32 %v1135_v16, %v878_v7  ;;  %v3474_v19 = vpop.f32.mrb[9].mxu1  ;;  %v1141_v20 = vadd.f32 %v1094_v18, %v837_v47  ;;  %v1096_v21 = vpop.f32.mrb[9].mxu0 }
 0x1a2   : > { %v1138_v22 = vpop.f32.mrb[10].mxu1  ;;  %v1142_v23 = vadd.f32 %v1096_v21, %v839_v12  ;;  %v1098_v24 = vpop.f32.mrb[10].mxu0 }
 0x1a3   : > { %v3475_v25 = vpop.f32.mrb[11].mxu1  ;;  %v1099_v26 = vpop.f32.mrb[11].mxu0 }
 0x1c0   : > { %v1396_v48 = vpop.f32.mrb[12].mxu1  ;;  %v1355_v42 = vpop.f32.mrb[12].mxu0 }
 0x1c1   : > { %v1404_v50 = vadd.f32 %v1396_v48, %v1143_v17  ;;  %v3494_v51 = vpop.f32.mrb[13].mxu1  ;;  %v1402_v52 = vadd.f32 %v1355_v42, %v1141_v20  ;;  %v1357_v53 = vpop.f32.mrb[13].mxu0 }
 0x1c2   : > { %v1399_v54 = vpop.f32.mrb[14].mxu1  ;;  %v1403_v56 = vadd.f32 %v1357_v53, %v1142_v23  ;;  %v1359_v57 = vpop.f32.mrb[14].mxu0 }
 0x1c3   : > { %v3495_v43 = vpop.f32.mrb[15].mxu1  ;;  %v1360_v59 = vpop.f32.mrb[15].mxu0 }
 0x1e0   : > { %v1657_v44 = vpop.f32.mrb[16].mxu1  ;;  %v1616_v2 = vpop.f32.mrb[16].mxu0 }
 0x1e1   : > { %v1665_v63 = vadd.f32 %v1657_v44, %v1404_v50  ;;  %v3514_v3 = vpop.f32.mrb[17].mxu1  ;;  %v1663_v4 = vadd.f32 %v1616_v2, %v1402_v52  ;;  %v1618_v5 = vpop.f32.mrb[17].mxu0  ;;  %v3975_v44 = vld [vmem:[%s4767_s5 + $0x8] sm:$0xff]   ;;  %v3977_v2 = vld [vmem:[%s4767_s5 + $0x18] sm:$0xff]  }
 0x1e2   : > { %v1660_v6 = vpop.f32.mrb[18].mxu1  ;;  %v1664_v7 = vadd.f32 %v1618_v5, %v1403_v56  ;;  %v1620_v8 = vpop.f32.mrb[18].mxu0  ;;  %v3978_v3 = vld [vmem:[%s4767_s5 + $0x20] sm:$0xff]   ;;  %v3980_v5 = vld [vmem:[%s4767_s5 + $0x30] sm:$0xff]  }
 0x1e3   : > { %v3515_v9 = vpop.f32.mrb[19].mxu1  ;;  %v1621_v47 = vpop.f32.mrb[19].mxu0  ;;  %v3981_v6 = vld [vmem:[%s4767_s5 + $0x38] sm:$0xff]  }
 0x200   : > { %v1918_v10 = vpop.f32.mrb[20].mxu1  ;;  %v1877_v12 = vpop.f32.mrb[20].mxu0 }
 0x201   : > { %v1926_v11 = vadd.f32 %v1918_v10, %v1665_v63  ;;  %v3534_v13 = vpop.f32.mrb[21].mxu1  ;;  %v1924_v14 = vadd.f32 %v1877_v12, %v1663_v4  ;;  %v1879_v15 = vpop.f32.mrb[21].mxu0  ;;  %v3976_v63 = vld [vmem:[%s4767_s5 + $0x10] sm:$0xff]   ;;  %v3979_v4 = vld [vmem:[%s4767_s5 + $0x28] sm:$0xff]  }
 0x202   : > { %v1921_v16 = vpop.f32.mrb[22].mxu1  ;;  %v1925_v17 = vadd.f32 %v1879_v15, %v1664_v7  ;;  %v1881_v18 = vpop.f32.mrb[22].mxu0 }
 0x203   : > { %v3535_v19 = vpop.f32.mrb[23].mxu1  ;;  %v1882_v20 = vpop.f32.mrb[23].mxu0 }
 0x204   : > { %v3288_v19 = vld [vmem:[%s4768_s6] ss:$0 sm:$0xff] }
 0x220   : > { %v2179_v21 = vpop.f32.mrb[24].mxu1  ;;  %v2138_v23 = vpop.f32.mrb[24].mxu0 }
 0x221   : > { %v2187_v22 = vadd.f32 %v2179_v21, %v1926_v11  ;;  %v3554_v24 = vpop.f32.mrb[25].mxu1  ;;  %v2185_v25 = vadd.f32 %v2138_v23, %v1924_v14  ;;  %v2140_v26 = vpop.f32.mrb[25].mxu0  ;;  %v3263_v11 = vld [vmem:[%s4766_s4] ss:$0 sm:$0xff] }
 0x222   : > { %v2182_v27 = vpop.f32.mrb[26].mxu1  ;;  %v2186_v28 = vadd.f32 %v2140_v26, %v1925_v17  ;;  %v2142_v29 = vpop.f32.mrb[26].mxu0 }
 0x223   : > { %v3555_v30 = vpop.f32.mrb[27].mxu1  ;;  %v2143_v31 = vpop.f32.mrb[27].mxu0 }
 0x240   : > { %v2440_v37 = vpop.f32.mrb[28].mxu1  ;;  %v2399_v45 = vpop.f32.mrb[28].mxu0 }
 0x241   : > { %v2448_v39 = vadd.f32 %v2440_v37, %v2187_v22  ;;  %v3574_v40 = vpop.f32.mrb[29].mxu1  ;;  %v2446_v48 = vadd.f32 %v2399_v45, %v2185_v25  ;;  %v2401_v49 = vpop.f32.mrb[29].mxu0  ;;  %v2903_v45 = vsub.s32 3, %v4638_v33 }
 0x242   : > { %v2443_v50 = vpop.f32.mrb[30].mxu1  ;;  %v2447_v51 = vadd.f32 %v2401_v49, %v2186_v28  ;;  %v2403_v52 = vpop.f32.mrb[30].mxu0  ;;  %v2910_v40 = vsub.s32 4, %v4638_v33  ;;  %v2924_v49 = vsub.s32 6, %v4638_v33 }
 0x243   : > { %v2468_v42 = vadd.f32 %v2462_v38, %v2448_v39  ;;  %v3575_v53 = vpop.f32.mrb[31].mxu1  ;;  %v2466_v54 = vadd.f32 %v2454_v41, %v2446_v48  ;;  %v2404_v55 = vpop.f32.mrb[31].mxu0  ;;  %v2931_v50 = vsub.s32 7, %v4638_v33 }
 0x244   : > { %v2467_v57 = vadd.f32 %v2458_v46, %v2447_v51  ;;  %v3986_v53 = vld [vmem:[%s4385_s22 + $0x10] sm:$0xff]  ;;  %v3987_v55 = vld [vmem:[%s4385_s22] sm:$0xff] }
 0x245   : > { %v2471_v56 = vmax.f32 %v2468_v42, 0.0  ;;  %v2469_v43 = vmax.f32 %v2466_v54, 0.0 }
 0x246   : > { %v2470_v59 = vmax.f32 %v2467_v57, 0.0 }
 0x247   : > { %v2474_v58 = vpack.c.bf16 %v2471_v56, %v2471_v56  ;;  %v2472_v62 = vpack.c.bf16 %v2469_v43, %v2469_v43  ;;  %v3988_v43 = vld [vmem:[%s4385_s22 + $0x8] sm:$0xff] }
 0x248   : > { %v2473_v60 = vpack.c.bf16 %v2470_v59, %v2470_v59  ;;  %v3989_v59 = vld [vmem:[%s4385_s22 + $0x18] sm:$0xff] }
 0x249   : > { %3593 = vmatmul.mubr.bf16.vlgmr.msra.gmra.mrb[32].mxu1 %v2474_v58 }
 0x24a   : > { %2706 = vmatprep.mubr.bf16.mxu0 %v2473_v60 }
 0x24b   : > { %2707 = vmatmul.mubr.bf16.vlgmr.msra.gmra.mrb[32].mxu0 %v2472_v62  ;;  %v3990_v62 = vld [vmem:[%s4385_s22 + $0x20] sm:$0xff] }
 0x24c   : > { %3597 = vmatpush3.bf16.msra.mxu0 %v3974_v61  ;;  %3612 = vmatprep.mubr.msk.bf16.mxu0 %vm4163_vm0, %v4161_v0 }
 0x24d   : > { %3598 = vmatprep.subr.bf16.mxu0 %v4161_v0 }
 0x250   : > { %3599 = vmatpush3.bf16.msra.mxu0 %v3975_v44 }
 0x251   : > { %3600 = vmatprep.subr.bf16.mxu0 %v4161_v0 }
 0x254   : > { %3601 = vmatpush3.bf16.msra.mxu0 %v3976_v63 }
 0x255   : > { %3602 = vmatprep.subr.bf16.mxu0 %v4161_v0 }
 0x258   : > { %3603 = vmatpush3.bf16.msra.mxu0 %v3977_v2  ;;  %v3991_v2 = vld [vmem:[%s4385_s22 + $0x28] sm:$0xff] }
 0x259   : > { %3604 = vmatprep.subr.bf16.mxu0 %v4161_v0 }
 0x25c   : > { %3605 = vmatpush3.bf16.msra.mxu0 %v3978_v3 }
 0x25d   : > { %3606 = vmatprep.subr.bf16.mxu0 %v4161_v0 }
 0x260   : > { %3607 = vmatpush3.bf16.msra.mxu0 %v3979_v4 }
 0x261   : > { %3608 = vmatprep.subr.bf16.mxu0 %v4161_v0 }
 0x264   : > { %3609 = vmatpush3.bf16.msra.mxu0 %v3980_v5  ;;  %v3992_v5 = vld [vmem:[%s4385_s22 + $0x30] sm:$0xff] }
 0x265   : > { %3610 = vmatprep.subr.bf16.mxu0 %v4161_v0 }
 0x268   : > { %3611 = vmatpush3.bf16.msra.mxu0 %v3981_v6 }
 0x31c   : > { %v2748_v7 = vpop.f32.mrb[32].mxu1 }
 0x31d   : > { %v3594_v8 = vpop.f32.mrb[33].mxu1 }
 0x31e   : > { %v2751_v9 = vpop.f32.mrb[34].mxu1  ;;  %v3392_v47 = vpop.f32.mrb[32].mxu0  ;;  %v3993_v8 = vld [vmem:[%s4385_s22 + $0x38] sm:$0xff] }
 0x31f   : > { %v3595_v10 = vpop.f32.mrb[35].mxu1  ;;  %v3393_v12 = vpop.f32.mrb[33].mxu0 }
 0x320   : > { %v3394_v13 = vadd.f32 %v3393_v12, %v3392_v47  ;;  %v3395_v14 = vpop.f32.mrb[34].mxu0 }
 0x321   : > { %v3396_v15 = vpop.f32.mrb[35].mxu0 }
 0x322   : > { %v2709_v16 = vadd.f32 %v3394_v13, %v3263_v11 }
 0x324   : > { %v2749_v0 = vadd.f32 %v2748_v7, %v2709_v16 }
 0x326   : > { %v2754_v17 = vmax.f32 %v2749_v0, 0.0 }
 0x328   : > { %v2755_v18 = vpack.c.bf16 %v2754_v17, %v2754_v17 }
 0x32a   : > { %3613 = vmatmul.mubr.bf16.vlgmr.msra.gmra.mrb[36].mxu0 %v2755_v18 }
 0x3fd   : > { %v2861_v20 = vpop.f32.mrb[36].mxu0 }
 0x3fe   : > { %v2862_v21 = vadd.f32 %v3288_v19, %v2861_v20  ;;  %v3614_v22 = vpop.f32.mrb[37].mxu0 }
 0x3ff   : > { %v2864_v23 = vpop.f32.mrb[38].mxu0 }
 0x400   : > { %v2867_v24 = vmax.f32 %v2862_v21, 0.0  ;;  %v3615_v25 = vpop.f32.mrb[39].mxu0 }
 0x402   : > { %v2869_v26 = vsel %vm2868_vm8, %v2867_v24, -inf }
 0x403   : > { %2870 = vmax.xlane.f32.xlu0 %v2869_v26 }
 0x490   : > { %v2871_v27 = vpop.xlane.xlu0 %2870 }
 0x491   : > { %v2872_v28 = vsub.f32 %v2867_v24, %v2871_v27 }
 0x493   : > { %v2873_v29 = vmul.f32 1.442695, %v2872_v28 }
 0x495   : > { %3982 = vpow2.f32 %v2873_v29 }
 0x49f   : > { %v3983_v30 = vpop.eup %3982 }
 0x4a0   : > { %v2875_v31 = vsel %vm2868_vm8, %v3983_v30, 0.0 }
 0x4a1   : > { %2876 = vadd.xlane.f32.xlu0 %v2875_v31 }
 0x52e   : > { %v2877_v32 = vpop.xlane.xlu0 %2876 }
 0x52f   : > { %3984 = vrcp.f32 %v2877_v32 }
 0x539   : > { %v3985_v35 = vpop.eup %3984 }
 0x53a   : > { %v2879_v38 = vmul.f32 %v3985_v35, %v3983_v30 }
 0x53c   : > { %v2897_v37 = vrot.slane %v2879_v38, %v2461_v34  ;;  %v2883_v41 = vrot.slane %v2879_v38, %v2453_v36  ;;  %v2890_v39 = vrot.slane %v2879_v38, %v2457_v1  ;;  %v2904_v46 = vrot.slane %v2879_v38, %v2903_v45 }
 0x53d   : > { %v2911_v48 = vrot.slane %v2879_v38, %v2910_v40  ;;  %v2917_v34 = vsub.s32 5, %v4638_v33  ;;  %v2925_v1 = vrot.slane %v2879_v38, %v2924_v49  ;;  %v2932_v42 = vrot.slane %v2879_v38, %v2931_v50 }
 0x53e   : > { %2899 = vbcast.lane.b32.xlu0 %v2897_v37, 256  ;;  %2885 = vbcast.lane.b32.xlu1 %v2883_v41, 256 }
 0x53f   : > { %v2918_v36 = vrot.slane %v2879_v38, %v2917_v34 }
 0x542   : > { %2892 = vbcast.lane.b32.xlu1 %v2890_v39, 256 }
 0x546   : > { %2906 = vbcast.lane.b32.xlu1 %v2904_v46, 256 }
 0x54a   : > { %2913 = vbcast.lane.b32.xlu1 %v2911_v48, 256 }
 0x54e   : > { %2920 = vbcast.lane.b32.xlu1 %v2918_v36, 256 }
 0x552   : > { %2927 = vbcast.lane.b32.xlu1 %v2925_v1, 256 }
 0x556   : > { %2934 = vbcast.lane.b32.xlu1 %v2932_v42, 256 }
 0x5b0   : > { %v2900_v51 = vpop.permute.xlu0 %2899  ;;  %v2886_v52 = vpop.permute.xlu1 %2885 }
 0x5b1   : > { %v2938_v54 = vmul.f32 %v3986_v53, %v2900_v51  ;;  %v2936_v56 = vmul.f32 %v3987_v55, %v2886_v52 }
 0x5b3   : > { %2946 = vst [vmem:[%s325_s30 + $0x10] sm:$0xff] %v2938_v54  ;;  %2944 = vst [vmem:[%s325_s30] sm:$0xff] %v2936_v56 }
 0x5b4   : > { %v2893_v57 = vpop.permute.xlu1 %2892 }
 0x5b5   : > { %v2937_v58 = vmul.f32 %v3988_v43, %v2893_v57 }
 0x5b7   : > { %2945 = vst [vmem:[%s325_s30 + $0x8] sm:$0xff] %v2937_v58 }
 0x5b8   : > { %v2907_v33 = vpop.permute.xlu1 %2906 }
 0x5b9   : > { %v2939_v60 = vmul.f32 %v3989_v59, %v2907_v33 }
 0x5bb   : > { %2947 = vst [vmem:[%s325_s30 + $0x18] sm:$0xff] %v2939_v60 }
 0x5bc   : > { %v2914_v61 = vpop.permute.xlu1 %2913 }
 0x5bd   : > { %v2940_v44 = vmul.f32 %v3990_v62, %v2914_v61 }
 0x5bf   : > { %2948 = vst [vmem:[%s325_s30 + $0x20] sm:$0xff] %v2940_v44 }
 0x5c0   : > { %v2921_v63 = vpop.permute.xlu1 %2920 }
 0x5c1   : > { %v2941_v3 = vmul.f32 %v3991_v2, %v2921_v63 }
 0x5c3   : > { %2949 = vst [vmem:[%s325_s30 + $0x28] sm:$0xff] %v2941_v3 }
 0x5c4   : > { %v2928_v4 = vpop.permute.xlu1 %2927 }
 0x5c5   : > { %v2942_v6 = vmul.f32 %v3992_v5, %v2928_v4 }
 0x5c7   : > { %2950 = vst [vmem:[%s325_s30 + $0x30] sm:$0xff] %v2942_v6 }
 0x5c8   : > { %v2935_v7 = vpop.permute.xlu1 %2934 }
 0x5c9   : > { %v2943_v9 = vmul.f32 %v3993_v8, %v2935_v7 }
 0x5cb   : > { %2951 = vst [vmem:[%s325_s30 + $0x38] sm:$0xff] %v2943_v9 }
 0x5cc   : > { %4093 = shalt.err (!%p4090_p2)
}
 0x5cd   : > { %s4094_s22 = scalar_lea.hbm %s4717_s29, 1024  ;;  %s4098_s30 = scalar_lea.hbm %s4769_s7, 2048 }
 0x5ce   : > { %p4095_p13 = scmp.ne.s32.totalorder %s4717_s29, %s4094_s22  ;;  %p4099_p4 = scmp.lt.u32.totalorder %s4717_s29, %s4769_s7 }
 0x5cf   : > { %p4100_p7 = scmp.lt.u32.totalorder %s4098_s30, %s4094_s22  ;;  %p4102_p11 = scmp.lt.u32.totalorder %s4094_s22, %s4717_s29 }
 0x5d0   : > { %p4096_p6 = pnand %p4095_p13, %p4783_p0 }
 0x5d1   : > { %p4101_p8 = por %p4100_p7, %p4099_p4 }
 0x5d2   : > { %p4097_p10 = pneg %p4096_p6 }
 0x5d3   : > { %p4103_p1 = por %p4102_p11, %p4101_p8 }
 0x5d5   : > { %p4104_p3 = pnand %p4103_p1, %p4097_p10 }
 0x5d7   : > { %4107 = shalt.err (!%p4104_p3)
}
 0x5d8   : > { %s4165_s23 = smov 128   ;;  %s4166_s16 = smov 8  }
 0x5d9   : > { %3626 = dma.vmem_to_hbm [thread:$0]  (%p4783_p0), %s4712_s21, 1024, %s4717_s29, %s2953_s10, %s4165_s23, %s4165_s23, %s4166_s16  }
 0x5da PF: > { %s2981_s28 = sand.u32 1, %s4138_s24   ;;  %p4784_p5 = scmp.ne.s32.totalorder %s4774_s8, 0 }
 0x5db   : > { %p4785_p9 = scmp.ge.s32.totalorder %s4150_s27, 2  ;;  %s2982_s19 = scalar_lea.sflag [#allocation4], %s2981_s28 }
 0x5dd   : > { %p3640_p12 = pnand %p4785_p9, %p4784_p5 }
 0x5df   : > { %4133 = dma.done.wait (!%p3640_p12), %s2982_s19, 1024  }
 0x5e0   : > { %4135 = vsyncadd (!%p3640_p12), %s2982_s19, 4294966272  ;;  %p21_p2 = scmp.ge.s32.totalorder %s4317_s13, 4   ;;  %s4786_s24 = smov %s4142_s25 }
 0x5e1   : > { %s4787_s25 = smov %s4146_s26  ;;  %s4788_s26 = smov %s4326_s17 }
 0x5e2   : > { %s4789_s27 = smov %s4317_s13  ;;  %23 = sbr.rel (!%p21_p2) target bundleno = 6 (0x6), region = 108 }
 0x5e9   :  { %2987 = vsyncpa [#allocation3], 1 }
 0x5ea   :  { %2989 = vsyncpa [#allocation3 + $0x1], 1 }
 0x5eb   :  { %2990 = vsyncpa [#allocation6], 1 }
 0x5ec   :  { %2991 = vsyncpa [#allocation4], 1 }
 0x5ed   :  { %2993 = vsyncpa [#allocation4 + $0x1], 1 }

</bundles_post_ra>
